<compile_context>
chip_gen: v7x
topology: tpu7x:2x2x1
jax: 0.10.0
libtpu: 0.0.40
codegen_flags: <defaults>
</compile_context>

<pallas_src>
import jax
import jax.numpy as jnp
from jax.experimental import pallas as pl
from jax.experimental.pallas import tpu as pltpu

_LANE = 128
_SUBLANE = 8


def _round_up(v, m):
    return (v + m - 1) // m * m


def _mlp_kernel(x_ref,
                w1_ref, b1_ref,
                w2_ref, b2_ref,
                w3_ref, b3_ref,
                w4_ref, b4_ref,
                w5_ref, b5_ref,
                o_ref):
    """Fused 5-layer MLP: (Linear+ReLU) x4 -> Linear -> Sigmoid.

    Matmuls run on the MXU with bf16 inputs / f32 accumulation; bias add, ReLU
    and the sigmoid epilogue run in f32 (exp + approx reciprocal on the EUP).
    """

    def linear(h_bf16, w_ref, b_ref):
        z = jnp.dot(h_bf16, w_ref[...], preferred_element_type=jnp.float32)
        return z + b_ref[...]

    h = x_ref[...]                                        # bf16 (TB, k_pad)
    h = jnp.maximum(linear(h, w1_ref, b1_ref), 0.0).astype(jnp.bfloat16)
    h = jnp.maximum(linear(h, w2_ref, b2_ref), 0.0).astype(jnp.bfloat16)
    h = jnp.maximum(linear(h, w3_ref, b3_ref), 0.0).astype(jnp.bfloat16)
    h = jnp.maximum(linear(h, w4_ref, b4_ref), 0.0).astype(jnp.bfloat16)
    z = linear(h, w5_ref, b5_ref)
    # Sigmoid: 1 / (1 + exp(-z)); both exp and approx reciprocal go to the EUP.
    o_ref[...] = (pl.reciprocal(1.0 + jnp.exp(-z), approx=True)).astype(o_ref.dtype)


def nninv_forward(x, params, *, block_batch=256):
    """Run the NNinv_net forward pass with a single fused Pallas kernel.

    x:      (N, bottleneck_dim) float32
    params: list of (W, b) with W shape (in, out) f32, b shape (1, out) f32
            (W is stored transposed vs. PyTorch's (out, in)).
    """
    n, k_in = x.shape
    out_dim = params[-1][0].shape[1]

    # ---- TPU-friendly padding -------------------------------------------
    n_pad = _round_up(max(n, 1), block_batch)        # batch -> tile multiple
    k_pad = _round_up(k_in, _SUBLANE)                # first-layer K (2 -> 8)
    out_pad = _round_up(out_dim, _LANE)              # lane-dense output stores

    x_p = jnp.zeros((n_pad, k_pad), jnp.bfloat16)
    x_p = x_p.at[:n, :k_in].set(x.astype(jnp.bfloat16))

    # Weights in bf16 (MXU inputs); biases in f32 for the epilogue add.
    prepped = []
    n_layers = len(params)
    for li, (w, b) in enumerate(params):
        w = w.astype(jnp.bfloat16)
        b = b.astype(jnp.float32)
        if li == 0 and k_pad != k_in:
            w = jnp.zeros((k_pad, w.shape[1]), jnp.bfloat16).at[:k_in, :].set(w)
        if li == n_layers - 1 and out_pad != out_dim:
            w = jnp.zeros((w.shape[0], out_pad), jnp.bfloat16).at[:, :out_dim].set(w)
            b = jnp.zeros((1, out_pad), jnp.float32).at[:, :out_dim].set(b)
        prepped.append((w, b))

    flat_args = []
    in_specs = [pl.BlockSpec((block_batch, k_pad), lambda i: (i, 0))]
    for w, b in prepped:
        flat_args.append(w)
        flat_args.append(b)
        # Full weight / bias resident in VMEM, constant block index.
        in_specs.append(pl.BlockSpec(w.shape, lambda i: (0, 0)))
        in_specs.append(pl.BlockSpec(b.shape, lambda i: (0, 0)))

    out_spec = pl.BlockSpec((block_batch, out_pad), lambda i: (i, 0))

    # Advisory cost estimate for the XLA scheduler.
    flops = 2 * n_pad * sum(w.shape[0] * w.shape[1] for w, _ in prepped)
    bytes_accessed = (
        x_p.size * x_p.dtype.itemsize
        + sum(w.size * w.dtype.itemsize + b.size * b.dtype.itemsize
              for w, b in prepped)
        + n_pad * out_pad * 4
    )
    cost = pl.CostEstimate(
        flops=int(flops),
        transcendentals=int(n_pad * out_pad),  # exp + approx recip in sigmoid
        bytes_accessed=int(bytes_accessed),
    )

    fn = pl.pallas_call(
        _mlp_kernel,
        out_shape=jax.ShapeDtypeStruct((n_pad, out_pad), jnp.float32),
        grid_spec=pltpu.PrefetchScalarGridSpec(
            num_scalar_prefetch=0,
            grid=(n_pad // block_batch,),
            in_specs=in_specs,
            out_specs=out_spec,
        ),
        compiler_params=pltpu.CompilerParams(
            dimension_semantics=("parallel",),   # batch tiles shard across TCs
            vmem_limit_bytes=64 << 20,           # safe on v5e/v6e/v7x
        ),
        cost_estimate=cost,
    )
    out = fn(x_p, *flat_args)
    return out[:n, :out_dim]


def init_params(key, bottleneck_dim, dims, out_dim):
    """Deterministic synthetic parameters (same shapes as the PyTorch module)."""
    layer_dims = [bottleneck_dim] + list(dims) + [out_dim]
    params = []
    for li in range(len(layer_dims) - 1):
        d_in, d_out = layer_dims[li], layer_dims[li + 1]
        key, kw, kb = jax.random.split(key, 3)
        scale = 1.0 / jnp.sqrt(jnp.float32(d_in))
        # PyTorch Linear weight is (out, in); we store the transpose (in, out).
        w = jax.random.uniform(kw, (d_in, d_out), jnp.float32, -scale, scale)
        b = jax.random.uniform(kb, (1, d_out), jnp.float32, -scale, scale)
        params.append((w, b))
    return params


def reference_forward(x, params):
    """Pure-JAX f32 reference of the PyTorch forward for verification."""
    h = x
    for w, b in params[:-1]:
        h = jnp.maximum(h @ w + b, 0.0)
    w, b = params[-1]
    return jax.nn.sigmoid(h @ w + b)


if __name__ == "__main__":
    # Small shapes consistent with the module: bottleneck_dim=2 input, hidden
    # dims (scaled down from 2048), out_dim = a small flattened image.  The
    # batch is deliberately NOT a multiple of the batch tile to exercise the
    # padding path.
    batch = 300
    bottleneck_dim = 2
    dims = [128, 128, 128, 128]
    out_dim = 64

    key = jax.random.PRNGKey(0)
    key, kx = jax.random.split(key)
    x = jax.random.normal(kx, (batch, bottleneck_dim), dtype=jnp.float32)

    params = init_params(key, bottleneck_dim, dims, out_dim)

    out = nninv_forward(x, params, block_batch=256)
    out = jax.block_until_ready(out)

    ref = reference_forward(x, params)
    assert out.shape == (batch, out_dim)
    # bf16 MXU inputs + approx reciprocal in the sigmoid -> looser tolerance
    # than the f32 reference (per review guidance).
    assert jnp.allclose(out, ref, atol=2e-2, rtol=2e-2), "mismatch vs reference"

    print("KERNEL_OK")
</pallas_src>

<mosaic_0001>
module attributes {stable_mosaic.version = 11 : i64} {
  func.func @_mlp_kernel(%arg0: i32, %arg1: memref<256x8xbf16, #tpu.memory_space<vmem>>, %arg2: memref<8x128xbf16, #tpu.memory_space<vmem>>, %arg3: memref<1x128xf32, #tpu.memory_space<vmem>>, %arg4: memref<128x128xbf16, #tpu.memory_space<vmem>>, %arg5: memref<1x128xf32, #tpu.memory_space<vmem>>, %arg6: memref<128x128xbf16, #tpu.memory_space<vmem>>, %arg7: memref<1x128xf32, #tpu.memory_space<vmem>>, %arg8: memref<128x128xbf16, #tpu.memory_space<vmem>>, %arg9: memref<1x128xf32, #tpu.memory_space<vmem>>, %arg10: memref<128x128xbf16, #tpu.memory_space<vmem>>, %arg11: memref<1x128xf32, #tpu.memory_space<vmem>>, %arg12: memref<256x128xf32, #tpu.memory_space<vmem>>) attributes {dimension_semantics = [#tpu.dimension_semantics<parallel>], iteration_bounds = array<i64: 2>, scalar_prefetch = 0 : i64, scratch_operands = 0 : i64, tpu.core_type = #tpu.core_type<tc>, window_params = [{transform_indices = @transform_0, window_bounds = array<i64: 256, 8>}, {pipeline_mode = #tpu.pipeline_mode<synchronous>, transform_indices = @transform_1, window_bounds = array<i64: 8, 128>}, {pipeline_mode = #tpu.pipeline_mode<synchronous>, transform_indices = @transform_2, window_bounds = array<i64: 1, 128>}, {pipeline_mode = #tpu.pipeline_mode<synchronous>, transform_indices = @transform_3, window_bounds = array<i64: 128, 128>}, {pipeline_mode = #tpu.pipeline_mode<synchronous>, transform_indices = @transform_4, window_bounds = array<i64: 1, 128>}, {pipeline_mode = #tpu.pipeline_mode<synchronous>, transform_indices = @transform_5, window_bounds = array<i64: 128, 128>}, {pipeline_mode = #tpu.pipeline_mode<synchronous>, transform_indices = @transform_6, window_bounds = array<i64: 1, 128>}, {pipeline_mode = #tpu.pipeline_mode<synchronous>, transform_indices = @transform_7, window_bounds = array<i64: 128, 128>}, {pipeline_mode = #tpu.pipeline_mode<synchronous>, transform_indices = @transform_8, window_bounds = array<i64: 1, 128>}, {pipeline_mode = #tpu.pipeline_mode<synchronous>, transform_indices = @transform_9, window_bounds = array<i64: 128, 128>}, {pipeline_mode = #tpu.pipeline_mode<synchronous>, transform_indices = @transform_10, window_bounds = array<i64: 1, 128>}, {transform_indices = @transform_11, window_bounds = array<i64: 256, 128>}]} {
    %c0 = arith.constant 0 : index
    %c0_0 = arith.constant 0 : index
    %0 = vector.load %arg1[%c0, %c0_0] : memref<256x8xbf16, #tpu.memory_space<vmem>>, vector<256x8xbf16>
    %c0_1 = arith.constant 0 : index
    %c0_2 = arith.constant 0 : index
    %1 = vector.load %arg2[%c0_1, %c0_2] : memref<8x128xbf16, #tpu.memory_space<vmem>>, vector<8x128xbf16>
    %cst = arith.constant dense<0.000000e+00> : vector<256x128xf32>
    %2 = tpu.matmul %0, %1, %cst {dimension_numbers = #tpu.dot_dimension_numbers<[1], [0], [0], [1], [0, 0, 1, 1], [], []>} : vector<256x8xbf16>, vector<8x128xbf16>, vector<256x128xf32> -> vector<256x128xf32>
    %c0_3 = arith.constant 0 : index
    %c0_4 = arith.constant 0 : index
    %3 = vector.load %arg3[%c0_3, %c0_4] : memref<1x128xf32, #tpu.memory_space<vmem>>, vector<1x128xf32>
    %4 = vector.broadcast %3 : vector<1x128xf32> to vector<256x128xf32>
    %5 = arith.addf %2, %4 : vector<256x128xf32>
    %cst_5 = arith.constant 0.000000e+00 : f32
    %6 = vector.broadcast %cst_5 : f32 to vector<256x128xf32>
    %7 = arith.maximumf %5, %6 : vector<256x128xf32>
    %8 = arith.truncf %7 : vector<256x128xf32> to vector<256x128xbf16>
    %c0_6 = arith.constant 0 : index
    %c0_7 = arith.constant 0 : index
    %9 = vector.load %arg4[%c0_6, %c0_7] : memref<128x128xbf16, #tpu.memory_space<vmem>>, vector<128x128xbf16>
    %cst_8 = arith.constant dense<0.000000e+00> : vector<256x128xf32>
    %10 = tpu.matmul %8, %9, %cst_8 {dimension_numbers = #tpu.dot_dimension_numbers<[1], [0], [0], [1], [0, 0, 1, 1], [], []>} : vector<256x128xbf16>, vector<128x128xbf16>, vector<256x128xf32> -> vector<256x128xf32>
    %c0_9 = arith.constant 0 : index
    %c0_10 = arith.constant 0 : index
    %11 = vector.load %arg5[%c0_9, %c0_10] : memref<1x128xf32, #tpu.memory_space<vmem>>, vector<1x128xf32>
    %12 = vector.broadcast %11 : vector<1x128xf32> to vector<256x128xf32>
    %13 = arith.addf %10, %12 : vector<256x128xf32>
    %cst_11 = arith.constant 0.000000e+00 : f32
    %14 = vector.broadcast %cst_11 : f32 to vector<256x128xf32>
    %15 = arith.maximumf %13, %14 : vector<256x128xf32>
    %16 = arith.truncf %15 : vector<256x128xf32> to vector<256x128xbf16>
    %c0_12 = arith.constant 0 : index
    %c0_13 = arith.constant 0 : index
    %17 = vector.load %arg6[%c0_12, %c0_13] : memref<128x128xbf16, #tpu.memory_space<vmem>>, vector<128x128xbf16>
    %cst_14 = arith.constant dense<0.000000e+00> : vector<256x128xf32>
    %18 = tpu.matmul %16, %17, %cst_14 {dimension_numbers = #tpu.dot_dimension_numbers<[1], [0], [0], [1], [0, 0, 1, 1], [], []>} : vector<256x128xbf16>, vector<128x128xbf16>, vector<256x128xf32> -> vector<256x128xf32>
    %c0_15 = arith.constant 0 : index
    %c0_16 = arith.constant 0 : index
    %19 = vector.load %arg7[%c0_15, %c0_16] : memref<1x128xf32, #tpu.memory_space<vmem>>, vector<1x128xf32>
    %20 = vector.broadcast %19 : vector<1x128xf32> to vector<256x128xf32>
    %21 = arith.addf %18, %20 : vector<256x128xf32>
    %cst_17 = arith.constant 0.000000e+00 : f32
    %22 = vector.broadcast %cst_17 : f32 to vector<256x128xf32>
    %23 = arith.maximumf %21, %22 : vector<256x128xf32>
    %24 = arith.truncf %23 : vector<256x128xf32> to vector<256x128xbf16>
    %c0_18 = arith.constant 0 : index
    %c0_19 = arith.constant 0 : index
    %25 = vector.load %arg8[%c0_18, %c0_19] : memref<128x128xbf16, #tpu.memory_space<vmem>>, vector<128x128xbf16>
    %cst_20 = arith.constant dense<0.000000e+00> : vector<256x128xf32>
    %26 = tpu.matmul %24, %25, %cst_20 {dimension_numbers = #tpu.dot_dimension_numbers<[1], [0], [0], [1], [0, 0, 1, 1], [], []>} : vector<256x128xbf16>, vector<128x128xbf16>, vector<256x128xf32> -> vector<256x128xf32>
    %c0_21 = arith.constant 0 : index
    %c0_22 = arith.constant 0 : index
    %27 = vector.load %arg9[%c0_21, %c0_22] : memref<1x128xf32, #tpu.memory_space<vmem>>, vector<1x128xf32>
    %28 = vector.broadcast %27 : vector<1x128xf32> to vector<256x128xf32>
    %29 = arith.addf %26, %28 : vector<256x128xf32>
    %cst_23 = arith.constant 0.000000e+00 : f32
    %30 = vector.broadcast %cst_23 : f32 to vector<256x128xf32>
    %31 = arith.maximumf %29, %30 : vector<256x128xf32>
    %32 = arith.truncf %31 : vector<256x128xf32> to vector<256x128xbf16>
    %c0_24 = arith.constant 0 : index
    %c0_25 = arith.constant 0 : index
    %33 = vector.load %arg10[%c0_24, %c0_25] : memref<128x128xbf16, #tpu.memory_space<vmem>>, vector<128x128xbf16>
    %cst_26 = arith.constant dense<0.000000e+00> : vector<256x128xf32>
    %34 = tpu.matmul %32, %33, %cst_26 {dimension_numbers = #tpu.dot_dimension_numbers<[1], [0], [0], [1], [0, 0, 1, 1], [], []>} : vector<256x128xbf16>, vector<128x128xbf16>, vector<256x128xf32> -> vector<256x128xf32>
    %c0_27 = arith.constant 0 : index
    %c0_28 = arith.constant 0 : index
    %35 = vector.load %arg11[%c0_27, %c0_28] : memref<1x128xf32, #tpu.memory_space<vmem>>, vector<1x128xf32>
    %36 = vector.broadcast %35 : vector<1x128xf32> to vector<256x128xf32>
    %37 = arith.addf %34, %36 : vector<256x128xf32>
    %cst_29 = arith.constant 0.000000e+00 : f32
    %38 = vector.broadcast %cst_29 : f32 to vector<256x128xf32>
    %39 = arith.subf %38, %37 : vector<256x128xf32>
    %40 = math.exp %39 : vector<256x128xf32>
    %cst_30 = arith.constant 1.000000e+00 : f32
    %41 = vector.broadcast %cst_30 : f32 to vector<256x128xf32>
    %42 = arith.addf %41, %40 : vector<256x128xf32>
    %43 = tpu.reciprocal %42 {approx = true} : vector<256x128xf32> -> vector<256x128xf32>
    %c0_31 = arith.constant 0 : index
    %c0_32 = arith.constant 0 : index
    %44 = vector.load %arg12[%c0_31, %c0_32] : memref<256x128xf32, #tpu.memory_space<vmem>>, vector<256x128xf32>
    tpu.vector_store %arg12[%c0_31, %c0_32], %43 {strides = array<i32>} : memref<256x128xf32, #tpu.memory_space<vmem>>, vector<256x128xf32>,
    return
  }
  func.func @transform_0(%arg0: i32) -> (i32, i32) {
    %c0_i32 = arith.constant 0 : i32
    %c0_i32_0 = arith.constant 0 : i32
    return %arg0, %c0_i32 : i32, i32
  }
  func.func @transform_1(%arg0: i32) -> (i32, i32) {
    %c0_i32 = arith.constant 0 : i32
    %c0_i32_0 = arith.constant 0 : i32
    %c0_i32_1 = arith.constant 0 : i32
    return %c0_i32, %c0_i32_0 : i32, i32
  }
  func.func @transform_2(%arg0: i32) -> (i32, i32) {
    %c0_i32 = arith.constant 0 : i32
    %c0_i32_0 = arith.constant 0 : i32
    %c0_i32_1 = arith.constant 0 : i32
    return %c0_i32, %c0_i32_0 : i32, i32
  }
  func.func @transform_3(%arg0: i32) -> (i32, i32) {
    %c0_i32 = arith.constant 0 : i32
    %c0_i32_0 = arith.constant 0 : i32
    %c0_i32_1 = arith.constant 0 : i32
    return %c0_i32, %c0_i32_0 : i32, i32
  }
  func.func @transform_4(%arg0: i32) -> (i32, i32) {
    %c0_i32 = arith.constant 0 : i32
    %c0_i32_0 = arith.constant 0 : i32
    %c0_i32_1 = arith.constant 0 : i32
    return %c0_i32, %c0_i32_0 : i32, i32
  }
  func.func @transform_5(%arg0: i32) -> (i32, i32) {
    %c0_i32 = arith.constant 0 : i32
    %c0_i32_0 = arith.constant 0 : i32
    %c0_i32_1 = arith.constant 0 : i32
    return %c0_i32, %c0_i32_0 : i32, i32
  }
  func.func @transform_6(%arg0: i32) -> (i32, i32) {
    %c0_i32 = arith.constant 0 : i32
    %c0_i32_0 = arith.constant 0 : i32
    %c0_i32_1 = arith.constant 0 : i32
    return %c0_i32, %c0_i32_0 : i32, i32
  }
  func.func @transform_7(%arg0: i32) -> (i32, i32) {
    %c0_i32 = arith.constant 0 : i32
    %c0_i32_0 = arith.constant 0 : i32
    %c0_i32_1 = arith.constant 0 : i32
    return %c0_i32, %c0_i32_0 : i32, i32
  }
  func.func @transform_8(%arg0: i32) -> (i32, i32) {
    %c0_i32 = arith.constant 0 : i32
    %c0_i32_0 = arith.constant 0 : i32
    %c0_i32_1 = arith.constant 0 : i32
    return %c0_i32, %c0_i32_0 : i32, i32
  }
  func.func @transform_9(%arg0: i32) -> (i32, i32) {
    %c0_i32 = arith.constant 0 : i32
    %c0_i32_0 = arith.constant 0 : i32
    %c0_i32_1 = arith.constant 0 : i32
    return %c0_i32, %c0_i32_0 : i32, i32
  }
  func.func @transform_10(%arg0: i32) -> (i32, i32) {
    %c0_i32 = arith.constant 0 : i32
    %c0_i32_0 = arith.constant 0 : i32
    %c0_i32_1 = arith.constant 0 : i32
    return %c0_i32, %c0_i32_0 : i32, i32
  }
  func.func @transform_11(%arg0: i32) -> (i32, i32) {
    %c0_i32 = arith.constant 0 : i32
    %c0_i32_0 = arith.constant 0 : i32
    return %arg0, %c0_i32 : i32, i32
  }
}

</mosaic_0001>

<bundles_post_ra>
// kernel: tpu_custom_call.1
= control target key start
LH: loop header
LB: loop body
LE: loop exit
PB: predicated region body
PF: predicated region fallthrough
CT: control target
= control target key end

     0   :  { %s4277_s0 = inlined_call_operand.hbm [shape: bf16[512,8], index: 0, kind: input, shape index: {}]   ;;  %s4278_s1 = inlined_call_operand.hbm [shape: bf16[8,128], index: 1, kind: input, shape index: {}]   ;;  %s4279_s2 = inlined_call_operand.hbm [shape: f32[1,128], index: 2, kind: input, shape index: {}]   ;;  %s4280_s3 = inlined_call_operand.hbm [shape: bf16[128,128], index: 3, kind: input, shape index: {}]   ;;  %s4281_s4 = inlined_call_operand.hbm [shape: f32[1,128], index: 4, kind: input, shape index: {}]   ;;  %s4282_s5 = inlined_call_operand.hbm [shape: bf16[128,128], index: 5, kind: input, shape index: {}]   ;;  %s4283_s6 = inlined_call_operand.hbm [shape: f32[1,128], index: 6, kind: input, shape index: {}]   ;;  %s4284_s7 = inlined_call_operand.hbm [shape: bf16[128,128], index: 7, kind: input, shape index: {}]   ;;  %s4285_s8 = inlined_call_operand.hbm [shape: f32[1,128], index: 8, kind: input, shape index: {}]   ;;  %s4286_s9 = inlined_call_operand.hbm [shape: bf16[128,128], index: 9, kind: input, shape index: {}]   ;;  %s4287_s10 = inlined_call_operand.hbm [shape: f32[1,128], index: 10, kind: input, shape index: {}]   ;;  %s4288_s11 = inlined_call_operand.hbm [shape: f32[512,128], index: 11, kind: output, shape index: {}]  }
   0x1   :  { %4295 = sst [smem:[#allocation29_spill]] %s4278_s1 }
   0x2   :  { %4296 = sst [smem:[#allocation30_spill]] %s4280_s3 }
   0x3   :  { %4297 = sst [smem:[#allocation31_spill]] %s4288_s11 }
   0x4   :  { %16 = vsyncpa [#allocation3], 0 }
   0x5   :  { %18 = vsyncpa [#allocation3 + $0x1], 0 }
   0x6   :  { %19 = vsyncpa [#allocation6], 0 }
   0x7   :  { %20 = vsyncpa [#allocation9], 0 }
   0x8   :  { %21 = vsyncpa [#allocation12], 0 }
   0x9   :  { %22 = vsyncpa [#allocation15], 0 }
   0xa   :  { %23 = vsyncpa [#allocation18], 0 }
   0xb   :  { %24 = vsyncpa [#allocation4], 0 }
   0xc   :  { %26 = vsyncpa [#allocation4 + $0x1], 0  ;;  %s3618_s17 = smov 0   ;;  %s3620_s18 = smov 0  }
   0xd   :  { %s3622_s19 = smov 0   ;;  %s3624_s20 = smov 0  }
   0xe LB: > { %s3542_s21 = smov [#allocation5]   ;;  %s3639_s23 = sadd.s32 4294967295, %s3540_s20   ;;  %s3540_s20 = sphi %s3624_s20, %s4330_s20   ;;  %s3536_s19 = sphi %s3622_s19, %s4329_s19   ;;  %s3532_s18 = sphi %s3620_s18, %s4328_s18   ;;  %s3528_s17 = sphi %s3618_s17, %s4327_s17  }
   0xf   : > { %s312_s22 = sshll.u32 %s3542_s21, 4  ;;  %p2370_p0 = scmp.ge.s32.totalorder %s3540_s20, 1  ;;  %s313_s22 = int_to_ptr.vmem [resolvable:$true] %s312_s22 }
  0x10   : > { %p4289_p1 = scmp.eq.s32.totalorder %s3639_s23, 0  ;;  %p299_p2 = scmp.lt.s32.totalorder %s3540_s20, 3 }
  0x11   : > { %s3543_s25 = smov [#allocation8]   ;;  %s3544_s28 = smov [#allocation11]  }
  0x12   : > { %p3644_p3 = pnand %p2370_p0, %p299_p2  ;;  %s333_s26 = sshll.u32 %s3543_s25, 4  ;;  %s3651_s26 = int_to_ptr.vmem [resolvable:$true] %s333_s26 }
  0x13   : > { %s357_s29 = sshll.u32 %s3544_s28, 4  ;;  %s4301_s1 = sld [smem:[#allocation29_spill]]  ;;  %s3659_s29 = int_to_ptr.vmem [resolvable:$true] %s357_s29 }
  0x14   : > { %s4298_s24 = scalar_select %p3644_p3, 1, 0 }
  0x15   : > { %p2861_p5 = pneg %p3644_p3 }
  0x16   : > { %4299 = sst [smem:[#allocation28_spill]] %s4298_s24 }
  0x17   : > { %p3655_p6 = pnand %p2861_p5, %p4289_p1 }
  0x19   : > { %s3144_s13 = scalar_lea.hbm %s4301_s1, 64  ;;  %p3669_p8 = pneg %p3655_p6 }
  0x1a   : > { %p3145_p7 = scmp.ne.s32.totalorder %s4301_s1, %s3144_s13  ;;  %p3151_p11 = scmp.lt.u32.totalorder %s3144_s13, %s4301_s1 }
  0x1c   : > { %p3147_p9 = pnand %p3669_p8, %p3145_p7 }
  0x1e   : > { %p3148_p10 = pneg %p3147_p9 }
  0x20   : > { %p3153_p12 = pnand %p3151_p11, %p3148_p10 }
  0x22   : > { %3156 = shalt.err (!%p3153_p12)
}
  0x23   : > { %s3157_s28 = scalar_lea.vmem %s313_s22, 64  ;;  %p3165_p5 = scmp.lt.s32.totalorder %s313_s22, %s313_s22 }
  0x24   : > { %p3158_p13 = scmp.ne.s32.totalorder %s313_s22, %s3157_s28  ;;  %p3166_p4 = scmp.lt.s32.totalorder %s3157_s28, %s3157_s28 }
  0x26   : > { %p3160_p0 = pnand %p3158_p13, %p3669_p8  ;;  %p3167_p1 = por %p3166_p4, %p3165_p5 }
  0x28   : > { %p3161_p2 = pneg %p3160_p0 }
  0x2a   : > { %p3168_p3 = pnand %p3167_p1, %p3161_p2 }
  0x2c   : > { %3171 = shalt.err (!%p3168_p3)
}
  0x2d   : > { %2864 = dma.hbm_to_vmem [thread:$0]  (!%p3655_p6), %s4301_s1, 64, %s313_s22, [#allocation6]  }
  0x2e   : > { %s4303_s3 = sld [smem:[#allocation30_spill]] }
  0x34   : > { %s3172_s15 = scalar_lea.hbm %s4303_s3, 1024 }
  0x35   : > { %p3173_p7 = scmp.ne.s32.totalorder %s4303_s3, %s3172_s15  ;;  %p3179_p1 = scmp.lt.u32.totalorder %s3172_s15, %s4303_s3 }
  0x37   : > { %p3175_p9 = pnand %p3173_p7, %p3669_p8 }
  0x39   : > { %p3176_p4 = pneg %p3175_p9 }
  0x3b   : > { %p3181_p3 = pnand %p3179_p1, %p3176_p4 }
  0x3d   : > { %3184 = shalt.err (!%p3181_p3)
}
  0x3e   : > { %s3185_s22 = scalar_lea.vmem %s3651_s26, 1024  ;;  %p3193_p13 = scmp.lt.s32.totalorder %s3651_s26, %s3651_s26 }
  0x3f   : > { %p3186_p10 = scmp.ne.s32.totalorder %s3651_s26, %s3185_s22  ;;  %p3194_p0 = scmp.lt.s32.totalorder %s3185_s22, %s3185_s22 }
  0x41   : > { %p3188_p11 = pnand %p3186_p10, %p3669_p8  ;;  %p3195_p2 = por %p3194_p0, %p3193_p13 }
  0x43   : > { %p3189_p12 = pneg %p3188_p11 }
  0x45   : > { %p3196_p5 = pnand %p3195_p2, %p3189_p12 }
  0x47   : > { %3199 = shalt.err (!%p3196_p5)
}
  0x48   : > { %s4293_s30 = smov 64   ;;  %s3546_s11 = smov 4  }
  0x49   : > { %2870 = dma.hbm_to_vmem [thread:$0]  (!%p3655_p6), %s4303_s3, 1024, %s3651_s26, [#allocation9], %s4293_s30, %s4293_s30, %s3546_s11  }
  0x4a   : > { %s3200_s21 = scalar_lea.hbm %s4282_s5, 1024 }
  0x4b   : > { %p3201_p7 = scmp.ne.s32.totalorder %s4282_s5, %s3200_s21  ;;  %p3207_p1 = scmp.lt.u32.totalorder %s3200_s21, %s4282_s5 }
  0x4d   : > { %p3203_p9 = pnand %p3201_p7, %p3669_p8 }
  0x4f   : > { %p3204_p4 = pneg %p3203_p9 }
  0x51   : > { %p3209_p3 = pnand %p3207_p1, %p3204_p4 }
  0x53   : > { %3212 = shalt.err (!%p3209_p3)
}
  0x54   : > { %s3213_s26 = scalar_lea.vmem %s3659_s29, 1024  ;;  %p3221_p13 = scmp.lt.s32.totalorder %s3659_s29, %s3659_s29 }
  0x55   : > { %p3214_p10 = scmp.ne.s32.totalorder %s3659_s29, %s3213_s26  ;;  %p3222_p0 = scmp.lt.s32.totalorder %s3213_s26, %s3213_s26 }
  0x57   : > { %p3216_p11 = pnand %p3214_p10, %p3669_p8  ;;  %p3223_p2 = por %p3222_p0, %p3221_p13 }
  0x59   : > { %p3217_p12 = pneg %p3216_p11 }
  0x5b   : > { %p3224_p5 = pnand %p3223_p2, %p3217_p12 }
  0x5d   : > { %3227 = shalt.err (!%p3224_p5)
}
  0x5e   : > { %2876 = dma.hbm_to_vmem [thread:$0]  (!%p3655_p6), %s4282_s5, 1024, %s3659_s29, [#allocation12], %s4293_s30, %s4293_s30, %s3546_s11  }
  0x5f   : > { %s3547_s13 = smov [#allocation14]   ;;  %s3548_s15 = smov [#allocation17]  }
  0x60   : > { %s381_s14 = sshll.u32 %s3547_s13, 4  ;;  %s405_s21 = sshll.u32 %s3548_s15, 4  ;;  %s382_s14 = int_to_ptr.vmem [resolvable:$true] %s381_s14  ;;  %s406_s21 = int_to_ptr.vmem [resolvable:$true] %s405_s21 }
  0x61   : > { %s3228_s22 = scalar_lea.hbm %s4284_s7, 1024 }
  0x62   : > { %p3229_p7 = scmp.ne.s32.totalorder %s4284_s7, %s3228_s22  ;;  %p3235_p1 = scmp.lt.u32.totalorder %s3228_s22, %s4284_s7 }
  0x64   : > { %p3231_p9 = pnand %p3229_p7, %p3669_p8 }
  0x66   : > { %p3232_p4 = pneg %p3231_p9 }
  0x68   : > { %p3237_p3 = pnand %p3235_p1, %p3232_p4 }
  0x6a   : > { %3240 = shalt.err (!%p3237_p3)
}
  0x6b   : > { %s3241_s29 = scalar_lea.vmem %s382_s14, 1024  ;;  %p3249_p13 = scmp.lt.s32.totalorder %s382_s14, %s382_s14 }
  0x6c   : > { %p3242_p10 = scmp.ne.s32.totalorder %s382_s14, %s3241_s29  ;;  %p3250_p0 = scmp.lt.s32.totalorder %s3241_s29, %s3241_s29 }
  0x6e   : > { %p3244_p11 = pnand %p3242_p10, %p3669_p8  ;;  %p3251_p2 = por %p3250_p0, %p3249_p13 }
  0x70   : > { %p3245_p12 = pneg %p3244_p11 }
  0x72   : > { %p3252_p5 = pnand %p3251_p2, %p3245_p12 }
  0x74   : > { %3255 = shalt.err (!%p3252_p5)
}
  0x75   : > { %2882 = dma.hbm_to_vmem [thread:$0]  (!%p3655_p6), %s4284_s7, 1024, %s382_s14, [#allocation15], %s4293_s30, %s4293_s30, %s3546_s11  }
  0x76   : > { %s3256_s15 = scalar_lea.hbm %s4286_s9, 1024 }
  0x77   : > { %p3257_p7 = scmp.ne.s32.totalorder %s4286_s9, %s3256_s15  ;;  %p3263_p1 = scmp.lt.u32.totalorder %s3256_s15, %s4286_s9 }
  0x79   : > { %p3259_p9 = pnand %p3257_p7, %p3669_p8 }
  0x7b   : > { %p3260_p4 = pneg %p3259_p9 }
  0x7d   : > { %p3265_p3 = pnand %p3263_p1, %p3260_p4 }
  0x7f   : > { %3268 = shalt.err (!%p3265_p3)
}
  0x80   : > { %s3269_s1 = scalar_lea.vmem %s406_s21, 1024  ;;  %p3277_p13 = scmp.lt.s32.totalorder %s406_s21, %s406_s21 }
  0x81   : > { %p3270_p10 = scmp.ne.s32.totalorder %s406_s21, %s3269_s1  ;;  %p3278_p0 = scmp.lt.s32.totalorder %s3269_s1, %s3269_s1 }
  0x83   : > { %p3272_p11 = pnand %p3270_p10, %p3669_p8  ;;  %p3279_p2 = por %p3278_p0, %p3277_p13 }
  0x85   : > { %p3273_p12 = pneg %p3272_p11 }
  0x87   : > { %p3280_p5 = pnand %p3279_p2, %p3273_p12 }
  0x89   : > { %3283 = shalt.err (!%p3280_p5)
}
  0x8a   : > { %2888 = dma.hbm_to_vmem [thread:$0]  (!%p3655_p6), %s4286_s9, 1024, %s406_s21, [#allocation18], %s4293_s30, %s4293_s30, %s3546_s11  }
  0x8b   : > { %s3549_s3 = smov [#allocation7]   ;;  %s3550_s12 = smov [#allocation10]  }
  0x8c   : > { %s323_s24 = sshll.u32 %s3549_s3, 4  ;;  %s347_s13 = sshll.u32 %s3550_s12, 4  ;;  %s324_s24 = int_to_ptr.vmem [resolvable:$true] %s323_s24  ;;  %s348_s13 = int_to_ptr.vmem [resolvable:$true] %s347_s13 }
  0x8d   : > { %s3284_s28 = scalar_lea.hbm %s4279_s2, 16 }
  0x8e   : > { %p3285_p7 = scmp.ne.s32.totalorder %s4279_s2, %s3284_s28  ;;  %p3291_p1 = scmp.lt.u32.totalorder %s3284_s28, %s4279_s2 }
  0x90   : > { %p3287_p9 = pnand %p3285_p7, %p3669_p8 }
  0x92   : > { %p3288_p4 = pneg %p3287_p9 }
  0x94   : > { %p3293_p3 = pnand %p3291_p1, %p3288_p4 }
  0x96   : > { %3296 = shalt.err (!%p3293_p3)
}
  0x97   : > { %s3297_s21 = scalar_lea.vmem %s324_s24, 16  ;;  %s3304_s29 = scalar_lea.vmem %s324_s24, 32 }
  0x98   : > { %p3298_p10 = scmp.ne.s32.totalorder %s324_s24, %s3297_s21  ;;  %p3305_p13 = scmp.lt.s32.totalorder %s324_s24, %s324_s24 }
  0x99   : > { %p3306_p0 = scmp.lt.s32.totalorder %s3304_s29, %s3297_s21 }
  0x9a   : > { %p3300_p11 = pnand %p3298_p10, %p3669_p8 }
  0x9b   : > { %p3307_p2 = por %p3306_p0, %p3305_p13 }
  0x9c   : > { %p3301_p12 = pneg %p3300_p11 }
  0x9e   : > { %p3308_p5 = pnand %p3307_p2, %p3301_p12 }
  0xa0   : > { %3311 = shalt.err (!%p3308_p5)
}
  0xa1   : > { %2867 = dma.hbm_to_vmem [thread:$0]  (!%p3655_p6), %s4279_s2, 16, %s324_s24, [#allocation6]  }
  0xa2   : > { %s3312_s28 = scalar_lea.hbm %s4281_s4, 16 }
  0xa3   : > { %p3313_p7 = scmp.ne.s32.totalorder %s4281_s4, %s3312_s28  ;;  %p3319_p1 = scmp.lt.u32.totalorder %s3312_s28, %s4281_s4 }
  0xa5   : > { %p3315_p9 = pnand %p3313_p7, %p3669_p8 }
  0xa7   : > { %p3316_p4 = pneg %p3315_p9 }
  0xa9   : > { %p3321_p3 = pnand %p3319_p1, %p3316_p4 }
  0xab   : > { %3324 = shalt.err (!%p3321_p3)
}
  0xac   : > { %s3325_s21 = scalar_lea.vmem %s348_s13, 16  ;;  %s3332_s24 = scalar_lea.vmem %s348_s13, 32 }
  0xad   : > { %p3326_p10 = scmp.ne.s32.totalorder %s348_s13, %s3325_s21  ;;  %p3333_p13 = scmp.lt.s32.totalorder %s348_s13, %s348_s13 }
  0xae   : > { %p3334_p0 = scmp.lt.s32.totalorder %s3332_s24, %s3325_s21 }
  0xaf   : > { %p3328_p11 = pnand %p3326_p10, %p3669_p8 }
  0xb0   : > { %p3335_p2 = por %p3334_p0, %p3333_p13 }
  0xb1   : > { %p3329_p12 = pneg %p3328_p11 }
  0xb3   : > { %p3336_p5 = pnand %p3335_p2, %p3329_p12 }
  0xb5   : > { %3339 = shalt.err (!%p3336_p5)
}
  0xb6   : > { %2873 = dma.hbm_to_vmem [thread:$0]  (!%p3655_p6), %s4281_s4, 16, %s348_s13, [#allocation9]  }
  0xb7   : > { %s3551_s12 = smov [#allocation13]   ;;  %s3552_s25 = smov [#allocation16]  }
  0xb8   : > { %s371_s15 = sshll.u32 %s3551_s12, 4  ;;  %s395_s28 = sshll.u32 %s3552_s25, 4  ;;  %s372_s15 = int_to_ptr.vmem [resolvable:$true] %s371_s15  ;;  %s396_s28 = int_to_ptr.vmem [resolvable:$true] %s395_s28 }
  0xb9   : > { %s3340_s1 = scalar_lea.hbm %s4283_s6, 16 }
  0xba   : > { %p3341_p7 = scmp.ne.s32.totalorder %s4283_s6, %s3340_s1  ;;  %p3347_p1 = scmp.lt.u32.totalorder %s3340_s1, %s4283_s6 }
  0xbc   : > { %p3343_p9 = pnand %p3341_p7, %p3669_p8 }
  0xbe   : > { %p3344_p4 = pneg %p3343_p9 }
  0xc0   : > { %p3349_p3 = pnand %p3347_p1, %p3344_p4 }
  0xc2   : > { %3352 = shalt.err (!%p3349_p3)
}
  0xc3   : > { %s3353_s13 = scalar_lea.vmem %s372_s15, 16  ;;  %s3360_s3 = scalar_lea.vmem %s372_s15, 32 }
  0xc4   : > { %p3354_p10 = scmp.ne.s32.totalorder %s372_s15, %s3353_s13  ;;  %p3361_p13 = scmp.lt.s32.totalorder %s372_s15, %s372_s15 }
  0xc5   : > { %p3362_p0 = scmp.lt.s32.totalorder %s3360_s3, %s3353_s13 }
  0xc6   : > { %p3356_p11 = pnand %p3354_p10, %p3669_p8 }
  0xc7   : > { %p3363_p2 = por %p3362_p0, %p3361_p13 }
  0xc8   : > { %p3357_p12 = pneg %p3356_p11 }
  0xca   : > { %p3364_p5 = pnand %p3363_p2, %p3357_p12 }
  0xcc   : > { %3367 = shalt.err (!%p3364_p5)
}
  0xcd   : > { %2879 = dma.hbm_to_vmem [thread:$0]  (!%p3655_p6), %s4283_s6, 16, %s372_s15, [#allocation12]  }
  0xce   : > { %s3368_s1 = scalar_lea.hbm %s4285_s8, 16 }
  0xcf   : > { %p3369_p7 = scmp.ne.s32.totalorder %s4285_s8, %s3368_s1  ;;  %p3375_p1 = scmp.lt.u32.totalorder %s3368_s1, %s4285_s8 }
  0xd1   : > { %p3371_p9 = pnand %p3369_p7, %p3669_p8 }
  0xd3   : > { %p3372_p4 = pneg %p3371_p9 }
  0xd5   : > { %p3377_p3 = pnand %p3375_p1, %p3372_p4 }
  0xd7   : > { %3380 = shalt.err (!%p3377_p3)
}
  0xd8   : > { %s3381_s13 = scalar_lea.vmem %s396_s28, 16  ;;  %s3388_s15 = scalar_lea.vmem %s396_s28, 32 }
  0xd9   : > { %p3382_p10 = scmp.ne.s32.totalorder %s396_s28, %s3381_s13  ;;  %p3389_p13 = scmp.lt.s32.totalorder %s396_s28, %s396_s28 }
  0xda   : > { %p3390_p0 = scmp.lt.s32.totalorder %s3388_s15, %s3381_s13 }
  0xdb   : > { %p3384_p11 = pnand %p3382_p10, %p3669_p8 }
  0xdc   : > { %p3391_p2 = por %p3390_p0, %p3389_p13 }
  0xdd   : > { %p3385_p12 = pneg %p3384_p11 }
  0xdf   : > { %p3392_p5 = pnand %p3391_p2, %p3385_p12 }
  0xe1   : > { %3395 = shalt.err (!%p3392_p5)
}
  0xe2   : > { %2885 = dma.hbm_to_vmem [thread:$0]  (!%p3655_p6), %s4285_s8, 16, %s396_s28, [#allocation15]  }
  0xe3   : > { %s3553_s25 = smov [#allocation19]   ;;  %s3396_s14 = scalar_lea.hbm %s4287_s10, 16 }
  0xe4   : > { %s419_s22 = sshll.u32 %s3553_s25, 4  ;;  %p3397_p7 = scmp.ne.s32.totalorder %s4287_s10, %s3396_s14  ;;  %s420_s22 = int_to_ptr.vmem [resolvable:$true] %s419_s22 }
  0xe5   : > { %p3403_p1 = scmp.lt.u32.totalorder %s3396_s14, %s4287_s10 }
  0xe6   : > { %p3399_p9 = pnand %p3397_p7, %p3669_p8 }
  0xe8   : > { %p3400_p4 = pneg %p3399_p9 }
  0xea   : > { %p3405_p3 = pnand %p3403_p1, %p3400_p4 }
  0xec   : > { %3408 = shalt.err (!%p3405_p3)
}
  0xed   : > { %s3409_s28 = scalar_lea.vmem %s420_s22, 16  ;;  %s3416_s15 = scalar_lea.vmem %s420_s22, 32 }
  0xee   : > { %p3410_p10 = scmp.ne.s32.totalorder %s420_s22, %s3409_s28  ;;  %p3417_p13 = scmp.lt.s32.totalorder %s420_s22, %s420_s22 }
  0xef   : > { %p3418_p0 = scmp.lt.s32.totalorder %s3416_s15, %s3409_s28 }
  0xf0   : > { %p3412_p11 = pnand %p3410_p10, %p3669_p8 }
  0xf1   : > { %p3419_p2 = por %p3418_p0, %p3417_p13 }
  0xf2   : > { %p3413_p12 = pneg %p3412_p11 }
  0xf4   : > { %p3420_p5 = pnand %p3419_p2, %p3413_p12 }
  0xf6   : > { %3423 = shalt.err (!%p3420_p5)
}
  0xf7   : > { %2891 = dma.hbm_to_vmem [thread:$0]  (!%p3655_p6), %s4287_s10, 16, %s420_s22, [#allocation18]  }
  0xf8   : > { %s2369_s16 = sadd.s32 4294967294, %s3540_s20   ;;  %s3871_s27 = sadd.s32 1, %s3540_s20  }
  0xf9   : > { %s36_s25 = ssub.s32 %s3540_s20, %s3871_s27  ;;  %s39_s26 = sadd.s32 1, %s3536_s19 }
  0xfa   : > { %p37_p8 = scmp.eq.s32.totalorder %s36_s25, 0  ;;  %p46_p7 = scmp.ne.s32.totalorder %s3536_s19, %s3532_s18 }
  0xfb   : > { %p47_p9 = scmp.eq.s32.totalorder %s3540_s20, 0  ;;  %p52_p4 = scmp.ne.s32.totalorder %s3532_s18, %s3528_s17 }
  0xfc   : > { %s3882_s1 = scalar_select %p37_p8, %s3536_s19, %s39_s26  }
  0xfd   : > { %p3884_p1 = por %p47_p9, %p46_p7  ;;  %p4305_p3 = scmp.eq.s32.totalorder %s3639_s23, 0 }
  0xfe   : > { %p286_p10 = scmp.eq.s32.totalorder %s3639_s23, 1  ;;  %p292_p11 = scmp.eq.s32.totalorder %s2369_s16, 1 }
  0xff   : > { %p3890_p6 = por %p4305_p3, %p52_p4  ;;  %p2910_p12 = scmp.lt.s32.totalorder %s3540_s20, 2 }
 0x100   : > { %s430_s21 = sand.u32 1, %s3536_s19   ;;  %p3897_p13 = por %p286_p10, %p46_p7 }
 0x101   : > { %p3901_p0 = por %p292_p11, %p52_p4  ;;  %s2382_s13 = sshll.u32 %s430_s21, 7 }
 0x102   : > { %s4307_s24 = scalar_select %p3897_p13, 1, 0 }
 0x103   : > { %s4308_s29 = scalar_select %p3901_p0, 1, 0 }
 0x104   : > { %s2472_s28 = sshll.u32 %s3540_s20, 11  ;;  %s434_s16 = scalar_lea.vmem [#allocation2], %s2382_s13 }
 0x105   : > { %s3909_s12 = scalar_lea.hbm %s4277_s0, %s2472_s28  ;;  %s441_s25 = sshll.u32 %s434_s16, 4  ;;  %s3911_s25 = int_to_ptr.vmem [resolvable:$true] %s441_s25 }
 0x106   : > { %p3915_p2 = pnand %p2910_p12, %p3884_p1  ;;  %s3919_s30 = scalar_lea.sflag [#allocation3], %s430_s21 }
 0x107   : > { %s3424_s15 = scalar_lea.hbm %s3909_s12, 2048  ;;  %s3429_s14 = scalar_lea.hbm %s4277_s0, 4096 }
 0x108   : > { %p3425_p5 = scmp.ne.s32.totalorder %s3909_s12, %s3424_s15  ;;  %p3426_p8 = pneg %p3915_p2 }
 0x109   : > { %p3430_p4 = scmp.lt.u32.totalorder %s3909_s12, %s4277_s0  ;;  %p3431_p1 = scmp.lt.u32.totalorder %s3429_s14, %s3424_s15 }
 0x10a   : > { %p3427_p7 = pnand %p3426_p8, %p3425_p5  ;;  %p3433_p10 = scmp.lt.u32.totalorder %s3424_s15, %s3909_s12 }
 0x10b   : > { %p3432_p3 = por %p3431_p1, %p3430_p4 }
 0x10c   : > { %p3428_p9 = pneg %p3427_p7 }
 0x10d   : > { %p3434_p11 = por %p3433_p10, %p3432_p3 }
 0x10f   : > { %p3435_p12 = pnand %p3434_p11, %p3428_p9 }
 0x111   : > { %3438 = shalt.err (!%p3435_p12)
}
 0x112   : > { %s3439_s21 = scalar_lea.vmem %s3911_s25, 2048  ;;  %s3554_s13 = smov [#allocation2]  }
 0x113   : > { %p3440_p5 = scmp.ne.s32.totalorder %s3911_s25, %s3439_s21  ;;  %s3444_s28 = sshll.u32 %s3554_s13, 4  ;;  %s3445_s28 = int_to_ptr.vmem [resolvable:$false] %s3444_s28 }
 0x114   : > { %s3446_s3 = scalar_lea.vmem %s3445_s28, 4096  ;;  %p3447_p13 = scmp.lt.s32.totalorder %s3911_s25, %s3445_s28 }
 0x115   : > { %p3442_p7 = pnand %p3440_p5, %p3426_p8  ;;  %p3448_p4 = scmp.lt.s32.totalorder %s3446_s3, %s3439_s21 }
 0x117   : > { %p3443_p0 = pneg %p3442_p7  ;;  %p3449_p1 = por %p3448_p4, %p3447_p13 }
 0x119   : > { %p3450_p3 = pnand %p3449_p1, %p3443_p0 }
 0x11b   : > { %3453 = shalt.err (!%p3450_p3)
}
 0x11c   : > { %s4310_s15 = smov 64   ;;  %s4311_s14 = sld [smem:[#allocation28_spill]] }
 0x11d   : > { %2895 = dma.hbm_to_vmem [thread:$0]  (!%p3915_p2), %s3909_s12, 2048, %s3911_s25, %s3919_s30, %s4310_s15, %s4310_s15, %s3546_s11  }
 0x122   : > { %p4312_p8 = scmp.ne.s32.totalorder %s4311_s14, 0 }
 0x123   : > { %s3953_s16 = sand.u32 (!%p4312_p8), 1, %s3532_s18  }
 0x124   : > { %453 = sbr.rel (%p4312_p8) target bundleno = 1528 (0x5f8), region = 64  ;;  %s2386_s21 = sshll.u32 (!%p4312_p8), %s3953_s16, 7 }
 0x125   : > { %s456_s13 = scalar_lea.sflag (!%p4312_p8), [#allocation3], %s3953_s16  ;;  %s3957_s28 = scalar_lea.vmem (!%p4312_p8), [#allocation2], %s2386_s21 }
 0x12b   : > { %3499 = dma.done.wait (%p3890_p6), %s456_s13, 2048  }
 0x12c   : > { %3501 = vsyncadd (%p3890_p6), %s456_s13, 4294965248  ;;  %p4313_p13 = scmp.eq.s32.totalorder %s3639_s23, 0 }
 0x12e   : > { %3503 = dma.done.wait (%p4313_p13), [#allocation6], 80   ;;  %p4314_p0 = pmov %p4313_p13 }
 0x130   : > { %3505 = vsyncadd (%p4314_p0), [#allocation6], 4294967216  ;;  %p4315_p2 = pmov %p4314_p0 }
 0x131   : > { %p4316_p9 = pmov %p4314_p0 }
 0x132   : > { %3507 = dma.done.wait (%p4315_p2), [#allocation9], 1040  }
 0x133   : > { %3509 = vsyncadd (%p4316_p9), [#allocation9], 4294966256  ;;  %p4317_p10 = pmov %p4314_p0 }
 0x134   : > { %p4318_p11 = pmov %p4314_p0 }
 0x135   : > { %3511 = dma.done.wait (%p4317_p10), [#allocation12], 1040  }
 0x136   : > { %3513 = vsyncadd (%p4318_p11), [#allocation12], 4294966256  ;;  %p4319_p6 = pmov %p4314_p0 }
 0x137   : > { %p4320_p12 = pmov %p4314_p0 }
 0x138   : > { %3515 = dma.done.wait (%p4319_p6), [#allocation15], 1040  }
 0x139   : > { %3517 = vsyncadd (%p4320_p12), [#allocation15], 4294966256  ;;  %p4321_p5 = pmov %p4314_p0 }
 0x13a   : > { %p4322_p7 = pmov %p4314_p0 }
 0x13b   : > { %3519 = dma.done.wait (%p4321_p5), [#allocation18], 1040  }
 0x13c   : > { %3521 = vsyncadd (%p4322_p7), [#allocation18], 4294966256  ;;  %vm710_vm0 = vcmask 1043456   ;;  %vm661_vm1 = vcmask 64512   ;;  %v573_v0 = vld [vmem:[#allocation5] sm:$0xf] }
 0x13d   : > { %2815 = vmatprep.subr.msk.bf16.mxu0 %vm710_vm0, %v573_v0  ;;  %v712_v1 = vsel %vm710_vm0, %v573_v0, 0  ;;  %v2968_v2 = vld [vmem:[%s3957_s28] sm:$0xff]   ;;  %2816 = vmatprep.subr.msk.bf16.mxu1 %vm710_vm0, %v573_v0  ;;  %v2969_v3 = vld [vmem:[%s3957_s28 + $0x8] sm:$0xff]   ;;  %v2970_v4 = vld [vmem:[%s3957_s28 + $0x10] sm:$0xff]   ;;  %s2397_s30 = sshll.u32 %s3953_s16, 8  ;;  %s2473_s22 = sshll.u32 %s3639_s23, 12 }
 0x13e   : > { %2588 = vmatpush3.bf16.msra.mxu0 %v712_v1  ;;  %2814 = vmatpush3.bf16.msra.mxu1 %v712_v1  ;;  %v2971_v5 = vld [vmem:[%s3957_s28 + $0x18] sm:$0xff]   ;;  %v2972_v6 = vld [vmem:[%s3957_s28 + $0x20] sm:$0xff]   ;;  %v2977_v8 = vld [vmem:[%s3957_s28 + $0x48] sm:$0xff]   ;;  %s4176_s11 = scalar_lea.vmem [#allocation20], %s2397_s30  ;;  %s4323_s3 = sld [smem:[#allocation31_spill]] }
 0x13f   : > { %2589 = vmatprep.mubr.msk.bf16.mxu0 %vm661_vm1, %v2968_v2  ;;  %v2976_v7 = vld [vmem:[%s3957_s28 + $0x40] sm:$0xff]   ;;  %v2978_v9 = vld [vmem:[%s3957_s28 + $0x50] sm:$0xff]   ;;  %v2973_v10 = vld [vmem:[%s3957_s28 + $0x28] sm:$0xff]   ;;  %s2201_s12 = sshll.u32 %s4176_s11, 4  ;;  %s2188_s23 = scalar_lea.sflag [#allocation4], %s3953_s16  ;;  %s4230_s12 = int_to_ptr.vmem [resolvable:$true] %s2201_s12 }
 0x140   : > { %2605 = vmatprep.mubr.msk.bf16.mxu1 %vm661_vm1, %v2976_v7  ;;  %v2979_v11 = vld [vmem:[%s3957_s28 + $0x58] sm:$0xff]   ;;  %v2980_v12 = vld [vmem:[%s3957_s28 + $0x60] sm:$0xff]   ;;  %v2974_v14 = vld [vmem:[%s3957_s28 + $0x30] sm:$0xff]   ;;  %s3454_s14 = scalar_lea.vmem %s4230_s12, 4096  ;;  %p4324_p1 = scmp.ne.s32.totalorder %s4307_s24, 0 }
 0x141   : > { %2590 = vmatmul.mubr.msk.bf16.vlgmr.msra.gmra.mrb[0].mxu0 %vm661_vm1, %v2969_v3  ;;  %2606 = vmatmul.mubr.msk.bf16.vlgmr.msra.gmra.mrb[0].mxu1 %vm661_vm1, %v2977_v8  ;;  %v2984_v13 = vld [vmem:[#allocation8] sm:$0xff]   ;;  %v2985_v15 = vld [vmem:[#allocation8 + $0x8] sm:$0xff]   ;;  %v2986_v17 = vld [vmem:[#allocation8 + $0x10] sm:$0xff]   ;;  %p3455_p4 = scmp.ne.s32.totalorder %s4230_s12, %s3454_s14  ;;  %s3555_s21 = smov [#allocation20]  }
 0x142   : > { %2593 = vmatprep.mubr.msk.bf16.mxu0 %vm661_vm1, %v2970_v4  ;;  %2609 = vmatprep.mubr.msk.bf16.mxu1 %vm661_vm1, %v2978_v9  ;;  %v2981_v16 = vld [vmem:[%s3957_s28 + $0x68] sm:$0xff]   ;;  %v2975_v18 = vld [vmem:[%s3957_s28 + $0x38] sm:$0xff]   ;;  %v2982_v19 = vld [vmem:[%s3957_s28 + $0x70] sm:$0xff]   ;;  %s3458_s13 = sshll.u32 %s3555_s21, 4  ;;  %s3459_s13 = int_to_ptr.vmem [resolvable:$false] %s3458_s13 }
 0x143   : > { %2621 = vmatprep.subr.bf16.mxu1 %v2984_v13  ;;  %v2987_v20 = vld [vmem:[#allocation8 + $0x18] sm:$0xff]   ;;  %v2988_v21 = vld [vmem:[#allocation8 + $0x20] sm:$0xff]   ;;  %v2989_v23 = vld [vmem:[#allocation8 + $0x28] sm:$0xff]   ;;  %p3456_p3 = pnand %p3455_p4, %p4324_p1  ;;  %p3461_p13 = scmp.lt.s32.totalorder %s4230_s12, %s3459_s13 }
 0x144   : > { %2622 = vmatpush3.bf16.msra.mxu1 %v2984_v13  ;;  %v2983_v22 = vld [vmem:[%s3957_s28 + $0x78] sm:$0xff]   ;;  %v2992_v26 = vld [vmem:[#allocation11] sm:$0xff]   ;;  %v2993_v27 = vld [vmem:[#allocation11 + $0x8] sm:$0xff]   ;;  %s4228_s15 = scalar_lea.hbm %s4323_s3, %s2473_s22  ;;  %s3460_s28 = scalar_lea.vmem %s3459_s13, 8192 }
 0x145   : > { %2623 = vmatprep.subr.bf16.mxu1 %v2985_v15  ;;  %v2990_v24 = vld [vmem:[#allocation8 + $0x30] sm:$0xff]   ;;  %v2991_v25 = vld [vmem:[#allocation8 + $0x38] sm:$0xff]   ;;  %2669 = vmatprep.subr.bf16.mxu0 %v2992_v26  ;;  %v2996_v30 = vld [vmem:[#allocation11 + $0x20] sm:$0xff]   ;;  %p3457_p8 = pneg %p3456_p3  ;;  %p3462_p0 = scmp.lt.s32.totalorder %s3460_s28, %s3454_s14 }
 0x146   : > { %2670 = vmatpush3.bf16.msra.mxu0 %v2992_v26  ;;  %v2994_v28 = vld [vmem:[#allocation11 + $0x10] sm:$0xff]   ;;  %v2995_v29 = vld [vmem:[#allocation11 + $0x18] sm:$0xff]   ;;  %v2997_v31 = vld [vmem:[#allocation11 + $0x28] sm:$0xff]  }
 0x147   : > { %2671 = vmatprep.subr.bf16.mxu0 %v2993_v27  ;;  %v4015_v32 = vld [vmem:[#allocation7] ss:$0 sm:$0xff]  ;;  %p3463_p2 = por %p3462_p0, %p3461_p13 }
 0x148   : > { %2624 = vmatpush3.bf16.msra.mxu1 %v2985_v15 }
 0x149   : > { %2594 = vmatmul.mubr.msk.bf16.gmra.mrb[4].mxu0 %vm661_vm1, %v2971_v5  ;;  %2610 = vmatmul.mubr.msk.bf16.gmra.mrb[4].mxu1 %vm661_vm1, %v2979_v11  ;;  %p3464_p9 = pnand %p3463_p2, %p3457_p8 }
 0x14a   : > { %2597 = vmatprep.mubr.msk.bf16.mxu0 %vm661_vm1, %v2972_v6  ;;  %2613 = vmatprep.mubr.msk.bf16.mxu1 %vm661_vm1, %v2980_v12 }
 0x14b   : > { %2625 = vmatprep.subr.bf16.mxu1 %v2986_v17  ;;  %2672 = vmatpush3.bf16.msra.mxu0 %v2993_v27 }
 0x14c   : > { %2626 = vmatpush3.bf16.msra.mxu1 %v2986_v17  ;;  %2673 = vmatprep.subr.bf16.mxu0 %v2994_v28 }
 0x14d   : > { %2627 = vmatprep.subr.bf16.mxu1 %v2987_v20 }
 0x14f   : > { %2674 = vmatpush3.bf16.msra.mxu0 %v2994_v28 }
 0x150   : > { %2628 = vmatpush3.bf16.msra.mxu1 %v2987_v20  ;;  %2675 = vmatprep.subr.bf16.mxu0 %v2995_v29 }
 0x151   : > { %2598 = vmatmul.mubr.msk.bf16.gmra.mrb[8].mxu0 %vm661_vm1, %v2973_v10  ;;  %2614 = vmatmul.mubr.msk.bf16.gmra.mrb[8].mxu1 %vm661_vm1, %v2981_v16 }
 0x152   : > { %2601 = vmatprep.mubr.msk.bf16.mxu0 %vm661_vm1, %v2974_v14  ;;  %2617 = vmatprep.mubr.msk.bf16.mxu1 %vm661_vm1, %v2982_v19 }
 0x153   : > { %2629 = vmatprep.subr.bf16.mxu1 %v2988_v21  ;;  %2676 = vmatpush3.bf16.msra.mxu0 %v2995_v29 }
 0x154   : > { %2630 = vmatpush3.bf16.msra.mxu1 %v2988_v21  ;;  %2677 = vmatprep.subr.bf16.mxu0 %v2996_v30 }
 0x155   : > { %2631 = vmatprep.subr.bf16.mxu1 %v2989_v23 }
 0x157   : > { %2678 = vmatpush3.bf16.msra.mxu0 %v2996_v30 }
 0x158   : > { %2632 = vmatpush3.bf16.msra.mxu1 %v2989_v23  ;;  %2679 = vmatprep.subr.bf16.mxu0 %v2997_v31 }
 0x159   : > { %2602 = vmatmul.mubr.msk.bf16.gmra.mrb[12].mxu0 %vm661_vm1, %v2975_v18  ;;  %2618 = vmatmul.mubr.msk.bf16.gmra.mrb[12].mxu1 %vm661_vm1, %v2983_v22 }
 0x15a   : > { %2633 = vmatprep.subr.bf16.mxu1 %v2990_v24 }
 0x15b   : > { %2680 = vmatpush3.bf16.msra.mxu0 %v2997_v31 }
 0x15c   : > { %2634 = vmatpush3.bf16.msra.mxu1 %v2990_v24 }
 0x15d   : > { %2635 = vmatprep.subr.bf16.mxu1 %v2991_v25 }
 0x160   : > { %2636 = vmatpush3.bf16.msra.mxu1 %v2991_v25 }
 0x214   : > { %v2591_v33 = vpop.f32.mrb[0].mxu0  ;;  %v2607_v46 = vpop.f32.mrb[0].mxu1 }
 0x215   : > { %v757_v34 = vadd.f32 %v2591_v33, %v4015_v32  ;;  %v748_v35 = vpop.f32.mrb[1].mxu0  ;;  %v821_v49 = vadd.f32 %v2607_v46, %v4015_v32  ;;  %v812_v50 = vpop.f32.mrb[1].mxu1 }
 0x216   : > { %v749_v36 = vadd.f32 %v4015_v32, %v748_v35  ;;  %v2592_v37 = vpop.f32.mrb[2].mxu0  ;;  %v813_v53 = vadd.f32 %v4015_v32, %v812_v50  ;;  %v2608_v54 = vpop.f32.mrb[2].mxu1 }
 0x217   : > { %v760_v38 = vadd.f32 %v2592_v37, %v4015_v32  ;;  %v751_v39 = vpop.f32.mrb[3].mxu0  ;;  %v877_v41 = vmax.f32 %v757_v34, 0.0  ;;  %v893_v57 = vmax.f32 %v821_v49, 0.0  ;;  %v824_v58 = vadd.f32 %v2608_v54, %v4015_v32  ;;  %v815_v59 = vpop.f32.mrb[3].mxu1 }
 0x218   : > { %v752_v40 = vadd.f32 %v4015_v32, %v751_v39  ;;  %v875_v43 = vmax.f32 %v749_v36, 0.0  ;;  %v891_v62 = vmax.f32 %v813_v53, 0.0  ;;  %v816_v63 = vadd.f32 %v4015_v32, %v815_v59 }
 0x219   : > { %v878_v42 = vmax.f32 %v760_v38, 0.0  ;;  %v894_v1 = vmax.f32 %v824_v58, 0.0 }
 0x21a   : > { %v876_v44 = vmax.f32 %v752_v40, 0.0  ;;  %v892_v4 = vmax.f32 %v816_v63, 0.0 }
 0x21b   : > { %v908_v45 = vpack.c.bf16 %v878_v42, %v877_v41  ;;  %v4029_v7 = vpack.c.bf16 %v894_v1, %v893_v57 }
 0x21c   : > { %v907_v47 = vpack.c.bf16 %v876_v44, %v875_v43  ;;  %v2595_v48 = vpop.f32.mrb[4].mxu0  ;;  %v4031_v9 = vpack.c.bf16 %v892_v4, %v891_v62  ;;  %v2611_v10 = vpop.f32.mrb[4].mxu1 }
 0x21d   : > { %v773_v51 = vadd.f32 %v2595_v48, %v4015_v32  ;;  %v764_v52 = vpop.f32.mrb[5].mxu0  ;;  %v837_v13 = vadd.f32 %v2611_v10, %v4015_v32  ;;  %v828_v14 = vpop.f32.mrb[5].mxu1 }
 0x21e   : > { %v765_v55 = vadd.f32 %v4015_v32, %v764_v52  ;;  %v2596_v56 = vpop.f32.mrb[6].mxu0  ;;  %2637 = vmatprep.mubr.bf16.mxu1 %v907_v47  ;;  %v829_v17 = vadd.f32 %v4015_v32, %v828_v14  ;;  %v2612_v18 = vpop.f32.mrb[6].mxu1 }
 0x21f   : > { %v776_v60 = vadd.f32 %v2596_v56, %v4015_v32  ;;  %v767_v61 = vpop.f32.mrb[7].mxu0  ;;  %2638 = vmatmul.mubr.bf16.vlgmr.msra.gmra.mrb[16].mxu1 %v908_v45  ;;  %v881_v2 = vmax.f32 %v773_v51, 0.0  ;;  %v897_v21 = vmax.f32 %v837_v13, 0.0  ;;  %v840_v22 = vadd.f32 %v2612_v18, %v4015_v32  ;;  %v831_v23 = vpop.f32.mrb[7].mxu1 }
 0x220   : > { %v768_v0 = vadd.f32 %v4015_v32, %v767_v61  ;;  %v879_v5 = vmax.f32 %v765_v55, 0.0  ;;  %v895_v26 = vmax.f32 %v829_v17, 0.0  ;;  %v832_v27 = vadd.f32 %v4015_v32, %v831_v23  ;;  %v3004_v23 = vld [vmem:[#allocation14 + $0x20] sm:$0xff]  }
 0x221   : > { %v882_v3 = vmax.f32 %v776_v60, 0.0  ;;  %v898_v29 = vmax.f32 %v840_v22, 0.0  ;;  %v3002_v22 = vld [vmem:[#allocation14 + $0x10] sm:$0xff]  }
 0x222   : > { %v880_v6 = vmax.f32 %v768_v0, 0.0  ;;  %v896_v33 = vmax.f32 %v832_v27, 0.0 }
 0x223   : > { %v910_v8 = vpack.c.bf16 %v882_v3, %v881_v2  ;;  %v918_v36 = vpack.c.bf16 %v898_v29, %v897_v21  ;;  %v2999_v21 = vld [vmem:[#allocation11 + $0x38] sm:$0xff]  }
 0x224   : > { %v909_v11 = vpack.c.bf16 %v880_v6, %v879_v5  ;;  %v2599_v12 = vpop.f32.mrb[8].mxu0  ;;  %v917_v38 = vpack.c.bf16 %v896_v33, %v895_v26  ;;  %v2615_v39 = vpop.f32.mrb[8].mxu1  ;;  %v4055_v26 = vld [vmem:[#allocation10] ss:$0 sm:$0xff] }
 0x225   : > { %v789_v15 = vadd.f32 %v2599_v12, %v4015_v32  ;;  %v780_v16 = vpop.f32.mrb[9].mxu0  ;;  %v853_v42 = vadd.f32 %v2615_v39, %v4015_v32  ;;  %v844_v43 = vpop.f32.mrb[9].mxu1 }
 0x226   : > { %v781_v19 = vadd.f32 %v4015_v32, %v780_v16  ;;  %v2600_v20 = vpop.f32.mrb[10].mxu0  ;;  %2641 = vmatprep.mubr.bf16.mxu1 %v909_v11  ;;  %v845_v46 = vadd.f32 %v4015_v32, %v844_v43  ;;  %v2616_v47 = vpop.f32.mrb[10].mxu1 }
 0x227   : > { %v792_v24 = vadd.f32 %v2600_v20, %v4015_v32  ;;  %v783_v25 = vpop.f32.mrb[11].mxu0  ;;  %2642 = vmatmul.mubr.bf16.gmra.mrb[20].mxu1 %v910_v8  ;;  %v885_v30 = vmax.f32 %v789_v15, 0.0  ;;  %v901_v50 = vmax.f32 %v853_v42, 0.0  ;;  %v856_v51 = vadd.f32 %v2616_v47, %v4015_v32  ;;  %v847_v52 = vpop.f32.mrb[11].mxu1  ;;  %v2998_v20 = vld [vmem:[#allocation11 + $0x30] sm:$0xff]  }
 0x228   : > { %v784_v28 = vadd.f32 %v4015_v32, %v783_v25  ;;  %v883_v34 = vmax.f32 %v781_v19, 0.0  ;;  %v899_v55 = vmax.f32 %v845_v46, 0.0  ;;  %v848_v56 = vadd.f32 %v4015_v32, %v847_v52  ;;  %2681 = vmatprep.subr.bf16.mxu0 %v2998_v20  ;;  %v3006_v25 = vld [vmem:[#allocation14 + $0x30] sm:$0xff]  }
 0x229   : > { %v886_v31 = vmax.f32 %v792_v24, 0.0  ;;  %v902_v58 = vmax.f32 %v856_v51, 0.0  ;;  %2682 = vmatpush3.bf16.msra.mxu0 %v2998_v20  ;;  %v3005_v24 = vld [vmem:[#allocation14 + $0x28] sm:$0xff]  }
 0x22a   : > { %v884_v35 = vmax.f32 %v784_v28, 0.0  ;;  %v900_v61 = vmax.f32 %v848_v56, 0.0  ;;  %2683 = vmatprep.subr.bf16.mxu0 %v2999_v21 }
 0x22b   : > { %v912_v37 = vpack.c.bf16 %v886_v31, %v885_v30  ;;  %v920_v0 = vpack.c.bf16 %v902_v58, %v901_v50 }
 0x22c   : > { %v911_v40 = vpack.c.bf16 %v884_v35, %v883_v34  ;;  %v2603_v41 = vpop.f32.mrb[12].mxu0  ;;  %v919_v2 = vpack.c.bf16 %v900_v61, %v899_v55  ;;  %v2619_v3 = vpop.f32.mrb[12].mxu1 }
 0x22d   : > { %v805_v44 = vadd.f32 %v2603_v41, %v4015_v32  ;;  %v796_v45 = vpop.f32.mrb[13].mxu0  ;;  %v869_v5 = vadd.f32 %v2619_v3, %v4015_v32  ;;  %v860_v6 = vpop.f32.mrb[13].mxu1  ;;  %2684 = vmatpush3.bf16.msra.mxu0 %v2999_v21 }
 0x22e   : > { %v797_v48 = vadd.f32 %v4015_v32, %v796_v45  ;;  %v2604_v49 = vpop.f32.mrb[14].mxu0  ;;  %2645 = vmatprep.mubr.bf16.mxu1 %v911_v40  ;;  %v861_v8 = vadd.f32 %v4015_v32, %v860_v6  ;;  %v2620_v10 = vpop.f32.mrb[14].mxu1 }
 0x22f   : > { %v808_v53 = vadd.f32 %v2604_v49, %v4015_v32  ;;  %v799_v54 = vpop.f32.mrb[15].mxu0  ;;  %2646 = vmatmul.mubr.bf16.gmra.mrb[24].mxu1 %v912_v37  ;;  %v889_v59 = vmax.f32 %v805_v44, 0.0  ;;  %v905_v11 = vmax.f32 %v869_v5, 0.0  ;;  %v872_v12 = vadd.f32 %v2620_v10, %v4015_v32  ;;  %v863_v13 = vpop.f32.mrb[15].mxu1 }
 0x230   : > { %v800_v57 = vadd.f32 %v4015_v32, %v799_v54  ;;  %v887_v62 = vmax.f32 %v797_v48, 0.0  ;;  %v903_v14 = vmax.f32 %v861_v8, 0.0  ;;  %v864_v15 = vadd.f32 %v4015_v32, %v863_v13  ;;  %v3000_v32 = vld [vmem:[#allocation14] sm:$0xff]  }
 0x231   : > { %v890_v60 = vmax.f32 %v808_v53, 0.0  ;;  %v906_v16 = vmax.f32 %v872_v12, 0.0  ;;  %2717 = vmatprep.subr.bf16.mxu1 %v3000_v32 }
 0x232   : > { %v888_v63 = vmax.f32 %v800_v57, 0.0  ;;  %v904_v17 = vmax.f32 %v864_v15, 0.0  ;;  %2718 = vmatpush3.bf16.msra.mxu1 %v3000_v32 }
 0x233   : > { %v914_v1 = vpack.c.bf16 %v890_v60, %v889_v59  ;;  %v922_v18 = vpack.c.bf16 %v906_v16, %v905_v11 }
 0x234   : > { %v913_v4 = vpack.c.bf16 %v888_v63, %v887_v62  ;;  %v921_v19 = vpack.c.bf16 %v904_v17, %v903_v14 }
 0x236   : > { %2649 = vmatprep.mubr.bf16.mxu1 %v913_v4 }
 0x237   : > { %2650 = vmatmul.mubr.bf16.gmra.mrb[28].mxu1 %v914_v1 }
 0x238   : > { %2653 = vmatprep.mubr.bf16.mxu1 %v4031_v9  ;;  %v3001_v9 = vld [vmem:[#allocation14 + $0x8] sm:$0xff]  }
 0x239   : > { %2719 = vmatprep.subr.bf16.mxu1 %v3001_v9 }
 0x23a   : > { %2720 = vmatpush3.bf16.msra.mxu1 %v3001_v9 }
 0x23b   : > { %2721 = vmatprep.subr.bf16.mxu1 %v3002_v22 }
 0x23e   : > { %2722 = vmatpush3.bf16.msra.mxu1 %v3002_v22 }
 0x23f   : > { %2654 = vmatmul.mubr.bf16.gmra.mrb[32].mxu1 %v4029_v7  ;;  %v3003_v7 = vld [vmem:[#allocation14 + $0x18] sm:$0xff]  }
 0x240   : > { %2657 = vmatprep.mubr.bf16.mxu1 %v917_v38  ;;  %2723 = vmatprep.subr.bf16.mxu1 %v3003_v7 }
 0x242   : > { %2724 = vmatpush3.bf16.msra.mxu1 %v3003_v7 }
 0x243   : > { %2725 = vmatprep.subr.bf16.mxu1 %v3004_v23 }
 0x246   : > { %2726 = vmatpush3.bf16.msra.mxu1 %v3004_v23 }
 0x247   : > { %2658 = vmatmul.mubr.bf16.gmra.mrb[36].mxu1 %v918_v36  ;;  %2727 = vmatprep.subr.bf16.mxu1 %v3005_v24 }
 0x248   : > { %2661 = vmatprep.mubr.bf16.mxu1 %v919_v2 }
 0x24a   : > { %2728 = vmatpush3.bf16.msra.mxu1 %v3005_v24 }
 0x24b   : > { %2729 = vmatprep.subr.bf16.mxu1 %v3006_v25 }
 0x24e   : > { %2730 = vmatpush3.bf16.msra.mxu1 %v3006_v25 }
 0x24f   : > { %2662 = vmatmul.mubr.bf16.gmra.mrb[40].mxu1 %v920_v0 }
 0x250   : > { %2665 = vmatprep.mubr.bf16.mxu1 %v921_v19 }
 0x257   : > { %2666 = vmatmul.mubr.bf16.gmra.mrb[44].mxu1 %v922_v18 }
 0x2f2   : > { %v2639_v27 = vpop.f32.mrb[16].mxu1 }
 0x2f3   : > { %v1037_v28 = vadd.f32 %v2639_v27, %v4055_v26  ;;  %v1028_v29 = vpop.f32.mrb[17].mxu1 }
 0x2f4   : > { %v1029_v30 = vadd.f32 %v4055_v26, %v1028_v29  ;;  %v2640_v31 = vpop.f32.mrb[18].mxu1 }
 0x2f5   : > { %v1040_v33 = vadd.f32 %v2640_v31, %v4055_v26  ;;  %v1031_v34 = vpop.f32.mrb[19].mxu1  ;;  %v1157_v36 = vmax.f32 %v1037_v28, 0.0 }
 0x2f6   : > { %v1032_v35 = vadd.f32 %v4055_v26, %v1031_v34  ;;  %v1155_v38 = vmax.f32 %v1029_v30, 0.0 }
 0x2f7   : > { %v1158_v37 = vmax.f32 %v1040_v33, 0.0 }
 0x2f8   : > { %v1156_v39 = vmax.f32 %v1032_v35, 0.0 }
 0x2f9   : > { %v1188_v40 = vpack.c.bf16 %v1158_v37, %v1157_v36 }
 0x2fa   : > { %v1187_v41 = vpack.c.bf16 %v1156_v39, %v1155_v38  ;;  %v2643_v42 = vpop.f32.mrb[20].mxu1 }
 0x2fb   : > { %v1053_v43 = vadd.f32 %v2643_v42, %v4055_v26  ;;  %v1044_v44 = vpop.f32.mrb[21].mxu1 }
 0x2fc   : > { %v1045_v45 = vadd.f32 %v4055_v26, %v1044_v44  ;;  %v2644_v46 = vpop.f32.mrb[22].mxu1  ;;  %2685 = vmatprep.mubr.bf16.mxu0 %v1187_v41 }
 0x2fd   : > { %v1056_v47 = vadd.f32 %v2644_v46, %v4055_v26  ;;  %v1047_v48 = vpop.f32.mrb[23].mxu1  ;;  %2686 = vmatmul.mubr.bf16.vlgmr.msra.gmra.mrb[16].mxu0 %v1188_v40  ;;  %v1161_v50 = vmax.f32 %v1053_v43, 0.0 }
 0x2fe   : > { %v1048_v49 = vadd.f32 %v4055_v26, %v1047_v48  ;;  %v1159_v52 = vmax.f32 %v1045_v45, 0.0 }
 0x2ff   : > { %v1162_v51 = vmax.f32 %v1056_v47, 0.0 }
 0x300   : > { %v1160_v53 = vmax.f32 %v1048_v49, 0.0 }
 0x301   : > { %v1190_v54 = vpack.c.bf16 %v1162_v51, %v1161_v50 }
 0x302   : > { %v1189_v55 = vpack.c.bf16 %v1160_v53, %v1159_v52  ;;  %v2647_v56 = vpop.f32.mrb[24].mxu1 }
 0x303   : > { %v1069_v57 = vadd.f32 %v2647_v56, %v4055_v26  ;;  %v1060_v58 = vpop.f32.mrb[25].mxu1 }
 0x304   : > { %v1061_v59 = vadd.f32 %v4055_v26, %v1060_v58  ;;  %v2648_v60 = vpop.f32.mrb[26].mxu1  ;;  %2689 = vmatprep.mubr.bf16.mxu0 %v1189_v55 }
 0x305   : > { %v1072_v61 = vadd.f32 %v2648_v60, %v4055_v26  ;;  %v1063_v62 = vpop.f32.mrb[27].mxu1  ;;  %2690 = vmatmul.mubr.bf16.gmra.mrb[20].mxu0 %v1190_v54  ;;  %v1165_v0 = vmax.f32 %v1069_v57, 0.0 }
 0x306   : > { %v1064_v63 = vadd.f32 %v4055_v26, %v1063_v62  ;;  %v1163_v2 = vmax.f32 %v1061_v59, 0.0 }
 0x307   : > { %v1166_v1 = vmax.f32 %v1072_v61, 0.0 }
 0x308   : > { %v1164_v3 = vmax.f32 %v1064_v63, 0.0 }
 0x309   : > { %v1192_v4 = vpack.c.bf16 %v1166_v1, %v1165_v0 }
 0x30a   : > { %v1191_v5 = vpack.c.bf16 %v1164_v3, %v1163_v2  ;;  %v2651_v6 = vpop.f32.mrb[28].mxu1 }
 0x30b   : > { %v1085_v8 = vadd.f32 %v2651_v6, %v4055_v26  ;;  %v1076_v10 = vpop.f32.mrb[29].mxu1 }
 0x30c   : > { %v1077_v11 = vadd.f32 %v4055_v26, %v1076_v10  ;;  %v2652_v12 = vpop.f32.mrb[30].mxu1  ;;  %2693 = vmatprep.mubr.bf16.mxu0 %v1191_v5 }
 0x30d   : > { %v1088_v13 = vadd.f32 %v2652_v12, %v4055_v26  ;;  %v1079_v14 = vpop.f32.mrb[31].mxu1  ;;  %2694 = vmatmul.mubr.bf16.gmra.mrb[24].mxu0 %v1192_v4  ;;  %v1169_v16 = vmax.f32 %v1085_v8, 0.0 }
 0x30e   : > { %v1080_v15 = vadd.f32 %v4055_v26, %v1079_v14  ;;  %v1167_v18 = vmax.f32 %v1077_v11, 0.0 }
 0x30f   : > { %v1170_v17 = vmax.f32 %v1088_v13, 0.0 }
 0x310   : > { %v1168_v19 = vmax.f32 %v1080_v15, 0.0  ;;  %v3007_v15 = vld [vmem:[#allocation14 + $0x38] sm:$0xff]  }
 0x311   : > { %v1194_v20 = vpack.c.bf16 %v1170_v17, %v1169_v16  ;;  %2731 = vmatprep.subr.bf16.mxu1 %v3007_v15  ;;  %v3008_v16 = vld [vmem:[#allocation17] sm:$0xff]   ;;  %v3009_v17 = vld [vmem:[#allocation17 + $0x8] sm:$0xff]  }
 0x312   : > { %v1193_v21 = vpack.c.bf16 %v1168_v19, %v1167_v18  ;;  %v2655_v32 = vpop.f32.mrb[32].mxu1  ;;  %2732 = vmatpush3.bf16.msra.mxu1 %v3007_v15  ;;  %2765 = vmatprep.subr.bf16.mxu0 %v3008_v16  ;;  %v3010_v18 = vld [vmem:[#allocation17 + $0x10] sm:$0xff]   ;;  %v3012_v19 = vld [vmem:[#allocation17 + $0x20] sm:$0xff]  }
 0x313   : > { %v1101_v9 = vadd.f32 %v2655_v32, %v4055_v26  ;;  %v1092_v22 = vpop.f32.mrb[33].mxu1  ;;  %2766 = vmatpush3.bf16.msra.mxu0 %v3008_v16  ;;  %v4089_v32 = vld [vmem:[#allocation13] ss:$0 sm:$0xff] }
 0x314   : > { %v1093_v7 = vadd.f32 %v4055_v26, %v1092_v22  ;;  %v2656_v23 = vpop.f32.mrb[34].mxu1  ;;  %2697 = vmatprep.mubr.bf16.mxu0 %v1193_v21  ;;  %2767 = vmatprep.subr.bf16.mxu0 %v3009_v17  ;;  %v3014_v21 = vld [vmem:[#allocation17 + $0x30] sm:$0xff]  }
 0x315   : > { %v1104_v24 = vadd.f32 %v2656_v23, %v4055_v26  ;;  %v1095_v25 = vpop.f32.mrb[35].mxu1  ;;  %2698 = vmatmul.mubr.bf16.gmra.mrb[28].mxu0 %v1194_v20  ;;  %v1173_v28 = vmax.f32 %v1101_v9, 0.0  ;;  %v3013_v20 = vld [vmem:[#allocation17 + $0x28] sm:$0xff]  }
 0x316   : > { %v1096_v27 = vadd.f32 %v4055_v26, %v1095_v25  ;;  %v1171_v30 = vmax.f32 %v1093_v7, 0.0 }
 0x317   : > { %v1174_v29 = vmax.f32 %v1104_v24, 0.0  ;;  %2768 = vmatpush3.bf16.msra.mxu0 %v3009_v17 }
 0x318   : > { %v1172_v31 = vmax.f32 %v1096_v27, 0.0  ;;  %2769 = vmatprep.subr.bf16.mxu0 %v3010_v18 }
 0x319   : > { %v1196_v33 = vpack.c.bf16 %v1174_v29, %v1173_v28 }
 0x31a   : > { %v1195_v34 = vpack.c.bf16 %v1172_v31, %v1171_v30  ;;  %v2659_v35 = vpop.f32.mrb[36].mxu1 }
 0x31b   : > { %v1117_v36 = vadd.f32 %v2659_v35, %v4055_v26  ;;  %v1108_v37 = vpop.f32.mrb[37].mxu1  ;;  %2770 = vmatpush3.bf16.msra.mxu0 %v3010_v18 }
 0x31c   : > { %v1109_v38 = vadd.f32 %v4055_v26, %v1108_v37  ;;  %v2660_v39 = vpop.f32.mrb[38].mxu1  ;;  %2701 = vmatprep.mubr.bf16.mxu0 %v1195_v34 }
 0x31d   : > { %v1120_v40 = vadd.f32 %v2660_v39, %v4055_v26  ;;  %v1111_v41 = vpop.f32.mrb[39].mxu1  ;;  %2702 = vmatmul.mubr.bf16.gmra.mrb[32].mxu0 %v1196_v33  ;;  %v1177_v43 = vmax.f32 %v1117_v36, 0.0 }
 0x31e   : > { %v1112_v42 = vadd.f32 %v4055_v26, %v1111_v41  ;;  %v1175_v45 = vmax.f32 %v1109_v38, 0.0 }
 0x31f   : > { %v1178_v44 = vmax.f32 %v1120_v40, 0.0 }
 0x320   : > { %v1176_v46 = vmax.f32 %v1112_v42, 0.0 }
 0x321   : > { %v1198_v47 = vpack.c.bf16 %v1178_v44, %v1177_v43 }
 0x322   : > { %v1197_v48 = vpack.c.bf16 %v1176_v46, %v1175_v45  ;;  %v2663_v49 = vpop.f32.mrb[40].mxu1 }
 0x323   : > { %v1133_v50 = vadd.f32 %v2663_v49, %v4055_v26  ;;  %v1124_v51 = vpop.f32.mrb[41].mxu1 }
 0x324   : > { %v1125_v52 = vadd.f32 %v4055_v26, %v1124_v51  ;;  %v2664_v53 = vpop.f32.mrb[42].mxu1  ;;  %2705 = vmatprep.mubr.bf16.mxu0 %v1197_v48 }
 0x325   : > { %v1136_v54 = vadd.f32 %v2664_v53, %v4055_v26  ;;  %v1127_v55 = vpop.f32.mrb[43].mxu1  ;;  %2706 = vmatmul.mubr.bf16.gmra.mrb[36].mxu0 %v1198_v47  ;;  %v1181_v57 = vmax.f32 %v1133_v50, 0.0 }
 0x326   : > { %v1128_v56 = vadd.f32 %v4055_v26, %v1127_v55  ;;  %v1179_v59 = vmax.f32 %v1125_v52, 0.0 }
 0x327   : > { %v1182_v58 = vmax.f32 %v1136_v54, 0.0 }
 0x328   : > { %v1180_v60 = vmax.f32 %v1128_v56, 0.0 }
 0x329   : > { %v1200_v61 = vpack.c.bf16 %v1182_v58, %v1181_v57 }
 0x32a   : > { %v1199_v62 = vpack.c.bf16 %v1180_v60, %v1179_v59  ;;  %v2667_v63 = vpop.f32.mrb[44].mxu1 }
 0x32b   : > { %v1149_v0 = vadd.f32 %v2667_v63, %v4055_v26  ;;  %v1140_v1 = vpop.f32.mrb[45].mxu1 }
 0x32c   : > { %v1141_v2 = vadd.f32 %v4055_v26, %v1140_v1  ;;  %v2668_v3 = vpop.f32.mrb[46].mxu1  ;;  %2709 = vmatprep.mubr.bf16.mxu0 %v1199_v62 }
 0x32d   : > { %v1152_v4 = vadd.f32 %v2668_v3, %v4055_v26  ;;  %v1143_v5 = vpop.f32.mrb[47].mxu1  ;;  %2710 = vmatmul.mubr.bf16.gmra.mrb[40].mxu0 %v1200_v61  ;;  %v1185_v8 = vmax.f32 %v1149_v0, 0.0 }
 0x32e   : > { %v1144_v6 = vadd.f32 %v4055_v26, %v1143_v5  ;;  %v1183_v11 = vmax.f32 %v1141_v2, 0.0  ;;  %v3011_v26 = vld [vmem:[#allocation17 + $0x18] sm:$0xff]  }
 0x32f   : > { %v1186_v10 = vmax.f32 %v1152_v4, 0.0  ;;  %2771 = vmatprep.subr.bf16.mxu0 %v3011_v26 }
 0x330   : > { %v1184_v12 = vmax.f32 %v1144_v6, 0.0  ;;  %2772 = vmatpush3.bf16.msra.mxu0 %v3011_v26 }
 0x331   : > { %v1202_v13 = vpack.c.bf16 %v1186_v10, %v1185_v8  ;;  %2773 = vmatprep.subr.bf16.mxu0 %v3012_v19 }
 0x332   : > { %v1201_v14 = vpack.c.bf16 %v1184_v12, %v1183_v11 }
 0x334   : > { %2713 = vmatprep.mubr.bf16.mxu0 %v1201_v14  ;;  %2774 = vmatpush3.bf16.msra.mxu0 %v3012_v19 }
 0x335   : > { %2714 = vmatmul.mubr.bf16.gmra.mrb[44].mxu0 %v1202_v13  ;;  %2775 = vmatprep.subr.bf16.mxu0 %v3013_v20 }
 0x338   : > { %2776 = vmatpush3.bf16.msra.mxu0 %v3013_v20 }
 0x339   : > { %2777 = vmatprep.subr.bf16.mxu0 %v3014_v21 }
 0x33c   : > { %2778 = vmatpush3.bf16.msra.mxu0 %v3014_v21 }
 0x3d0   : > { %v2687_v9 = vpop.f32.mrb[16].mxu0 }
 0x3d1   : > { %v1317_v22 = vadd.f32 %v2687_v9, %v4089_v32  ;;  %v1308_v7 = vpop.f32.mrb[17].mxu0 }
 0x3d2   : > { %v1309_v23 = vadd.f32 %v4089_v32, %v1308_v7  ;;  %v2688_v24 = vpop.f32.mrb[18].mxu0 }
 0x3d3   : > { %v1320_v25 = vadd.f32 %v2688_v24, %v4089_v32  ;;  %v1311_v27 = vpop.f32.mrb[19].mxu0  ;;  %v1437_v29 = vmax.f32 %v1317_v22, 0.0 }
 0x3d4   : > { %v1312_v28 = vadd.f32 %v4089_v32, %v1311_v27  ;;  %v1435_v31 = vmax.f32 %v1309_v23, 0.0 }
 0x3d5   : > { %v1438_v30 = vmax.f32 %v1320_v25, 0.0 }
 0x3d6   : > { %v1436_v33 = vmax.f32 %v1312_v28, 0.0 }
 0x3d7   : > { %v1468_v34 = vpack.c.bf16 %v1438_v30, %v1437_v29 }
 0x3d8   : > { %v1467_v35 = vpack.c.bf16 %v1436_v33, %v1435_v31  ;;  %v2691_v36 = vpop.f32.mrb[20].mxu0 }
 0x3d9   : > { %v1333_v37 = vadd.f32 %v2691_v36, %v4089_v32  ;;  %v1324_v38 = vpop.f32.mrb[21].mxu0 }
 0x3da   : > { %v1325_v39 = vadd.f32 %v4089_v32, %v1324_v38  ;;  %v2692_v40 = vpop.f32.mrb[22].mxu0  ;;  %2733 = vmatprep.mubr.bf16.mxu1 %v1467_v35 }
 0x3db   : > { %v1336_v41 = vadd.f32 %v2692_v40, %v4089_v32  ;;  %v1327_v42 = vpop.f32.mrb[23].mxu0  ;;  %2734 = vmatmul.mubr.bf16.vlgmr.msra.gmra.mrb[48].mxu1 %v1468_v34  ;;  %v1441_v44 = vmax.f32 %v1333_v37, 0.0 }
 0x3dc   : > { %v1328_v43 = vadd.f32 %v4089_v32, %v1327_v42  ;;  %v1439_v46 = vmax.f32 %v1325_v39, 0.0 }
 0x3dd   : > { %v1442_v45 = vmax.f32 %v1336_v41, 0.0 }
 0x3de   : > { %v1440_v47 = vmax.f32 %v1328_v43, 0.0 }
 0x3df   : > { %v1470_v48 = vpack.c.bf16 %v1442_v45, %v1441_v44 }
 0x3e0   : > { %v1469_v49 = vpack.c.bf16 %v1440_v47, %v1439_v46  ;;  %v2695_v50 = vpop.f32.mrb[24].mxu0 }
 0x3e1   : > { %v1349_v51 = vadd.f32 %v2695_v50, %v4089_v32  ;;  %v1340_v52 = vpop.f32.mrb[25].mxu0 }
 0x3e2   : > { %v1341_v53 = vadd.f32 %v4089_v32, %v1340_v52  ;;  %v2696_v54 = vpop.f32.mrb[26].mxu0  ;;  %2737 = vmatprep.mubr.bf16.mxu1 %v1469_v49 }
 0x3e3   : > { %v1352_v55 = vadd.f32 %v2696_v54, %v4089_v32  ;;  %v1343_v56 = vpop.f32.mrb[27].mxu0  ;;  %2738 = vmatmul.mubr.bf16.gmra.mrb[52].mxu1 %v1470_v48  ;;  %v1445_v58 = vmax.f32 %v1349_v51, 0.0 }
 0x3e4   : > { %v1344_v57 = vadd.f32 %v4089_v32, %v1343_v56  ;;  %v1443_v60 = vmax.f32 %v1341_v53, 0.0 }
 0x3e5   : > { %v1446_v59 = vmax.f32 %v1352_v55, 0.0 }
 0x3e6   : > { %v1444_v61 = vmax.f32 %v1344_v57, 0.0 }
 0x3e7   : > { %v1472_v62 = vpack.c.bf16 %v1446_v59, %v1445_v58 }
 0x3e8   : > { %v1471_v63 = vpack.c.bf16 %v1444_v61, %v1443_v60  ;;  %v2699_v0 = vpop.f32.mrb[28].mxu0 }
 0x3e9   : > { %v1365_v1 = vadd.f32 %v2699_v0, %v4089_v32  ;;  %v1356_v2 = vpop.f32.mrb[29].mxu0 }
 0x3ea   : > { %v1357_v3 = vadd.f32 %v4089_v32, %v1356_v2  ;;  %v2700_v4 = vpop.f32.mrb[30].mxu0  ;;  %2741 = vmatprep.mubr.bf16.mxu1 %v1471_v63 }
 0x3eb   : > { %v1368_v5 = vadd.f32 %v2700_v4, %v4089_v32  ;;  %v1359_v6 = vpop.f32.mrb[31].mxu0  ;;  %2742 = vmatmul.mubr.bf16.gmra.mrb[56].mxu1 %v1472_v62  ;;  %v1449_v10 = vmax.f32 %v1365_v1, 0.0 }
 0x3ec   : > { %v1360_v8 = vadd.f32 %v4089_v32, %v1359_v6  ;;  %v1447_v12 = vmax.f32 %v1357_v3, 0.0 }
 0x3ed   : > { %v1450_v11 = vmax.f32 %v1368_v5, 0.0 }
 0x3ee   : > { %v1448_v13 = vmax.f32 %v1360_v8, 0.0  ;;  %v3015_v8 = vld [vmem:[#allocation17 + $0x38] sm:$0xff]  }
 0x3ef   : > { %v1474_v14 = vpack.c.bf16 %v1450_v11, %v1449_v10  ;;  %2779 = vmatprep.subr.bf16.mxu0 %v3015_v8  ;;  %v4123_v10 = vld [vmem:[#allocation16] ss:$0 sm:$0xff] }
 0x3f0   : > { %v1473_v15 = vpack.c.bf16 %v1448_v13, %v1447_v12  ;;  %v2703_v16 = vpop.f32.mrb[32].mxu0  ;;  %2780 = vmatpush3.bf16.msra.mxu0 %v3015_v8 }
 0x3f1   : > { %v1381_v17 = vadd.f32 %v2703_v16, %v4089_v32  ;;  %v1372_v18 = vpop.f32.mrb[33].mxu0 }
 0x3f2   : > { %v1373_v26 = vadd.f32 %v4089_v32, %v1372_v18  ;;  %v2704_v19 = vpop.f32.mrb[34].mxu0  ;;  %2745 = vmatprep.mubr.bf16.mxu1 %v1473_v15 }
 0x3f3   : > { %v1384_v20 = vadd.f32 %v2704_v19, %v4089_v32  ;;  %v1375_v21 = vpop.f32.mrb[35].mxu0  ;;  %2746 = vmatmul.mubr.bf16.gmra.mrb[60].mxu1 %v1474_v14  ;;  %v1453_v22 = vmax.f32 %v1381_v17, 0.0 }
 0x3f4   : > { %v1376_v9 = vadd.f32 %v4089_v32, %v1375_v21  ;;  %v1451_v23 = vmax.f32 %v1373_v26, 0.0 }
 0x3f5   : > { %v1454_v7 = vmax.f32 %v1384_v20, 0.0 }
 0x3f6   : > { %v1452_v24 = vmax.f32 %v1376_v9, 0.0 }
 0x3f7   : > { %v1476_v25 = vpack.c.bf16 %v1454_v7, %v1453_v22 }
 0x3f8   : > { %v1475_v27 = vpack.c.bf16 %v1452_v24, %v1451_v23  ;;  %v2707_v28 = vpop.f32.mrb[36].mxu0 }
 0x3f9   : > { %v1397_v29 = vadd.f32 %v2707_v28, %v4089_v32  ;;  %v1388_v30 = vpop.f32.mrb[37].mxu0 }
 0x3fa   : > { %v1389_v31 = vadd.f32 %v4089_v32, %v1388_v30  ;;  %v2708_v33 = vpop.f32.mrb[38].mxu0  ;;  %2749 = vmatprep.mubr.bf16.mxu1 %v1475_v27 }
 0x3fb   : > { %v1400_v34 = vadd.f32 %v2708_v33, %v4089_v32  ;;  %v1391_v35 = vpop.f32.mrb[39].mxu0  ;;  %2750 = vmatmul.mubr.bf16.gmra.mrb[64].mxu1 %v1476_v25  ;;  %v1457_v37 = vmax.f32 %v1397_v29, 0.0 }
 0x3fc   : > { %v1392_v36 = vadd.f32 %v4089_v32, %v1391_v35  ;;  %v1455_v39 = vmax.f32 %v1389_v31, 0.0 }
 0x3fd   : > { %v1458_v38 = vmax.f32 %v1400_v34, 0.0 }
 0x3fe   : > { %v1456_v40 = vmax.f32 %v1392_v36, 0.0 }
 0x3ff   : > { %v1478_v41 = vpack.c.bf16 %v1458_v38, %v1457_v37 }
 0x400   : > { %v1477_v42 = vpack.c.bf16 %v1456_v40, %v1455_v39  ;;  %v2711_v43 = vpop.f32.mrb[40].mxu0 }
 0x401   : > { %v1413_v44 = vadd.f32 %v2711_v43, %v4089_v32  ;;  %v1404_v45 = vpop.f32.mrb[41].mxu0 }
 0x402   : > { %v1405_v46 = vadd.f32 %v4089_v32, %v1404_v45  ;;  %v2712_v47 = vpop.f32.mrb[42].mxu0  ;;  %2753 = vmatprep.mubr.bf16.mxu1 %v1477_v42 }
 0x403   : > { %v1416_v48 = vadd.f32 %v2712_v47, %v4089_v32  ;;  %v1407_v49 = vpop.f32.mrb[43].mxu0  ;;  %2754 = vmatmul.mubr.bf16.gmra.mrb[68].mxu1 %v1478_v41  ;;  %v1461_v51 = vmax.f32 %v1413_v44, 0.0 }
 0x404   : > { %v1408_v50 = vadd.f32 %v4089_v32, %v1407_v49  ;;  %v1459_v53 = vmax.f32 %v1405_v46, 0.0 }
 0x405   : > { %v1462_v52 = vmax.f32 %v1416_v48, 0.0 }
 0x406   : > { %v1460_v54 = vmax.f32 %v1408_v50, 0.0 }
 0x407   : > { %v1480_v55 = vpack.c.bf16 %v1462_v52, %v1461_v51 }
 0x408   : > { %v1479_v56 = vpack.c.bf16 %v1460_v54, %v1459_v53  ;;  %v2715_v57 = vpop.f32.mrb[44].mxu0 }
 0x409   : > { %v1429_v58 = vadd.f32 %v2715_v57, %v4089_v32  ;;  %v1420_v59 = vpop.f32.mrb[45].mxu0 }
 0x40a   : > { %v1421_v60 = vadd.f32 %v4089_v32, %v1420_v59  ;;  %v2716_v61 = vpop.f32.mrb[46].mxu0  ;;  %2757 = vmatprep.mubr.bf16.mxu1 %v1479_v56 }
 0x40b   : > { %v1432_v62 = vadd.f32 %v2716_v61, %v4089_v32  ;;  %v1423_v63 = vpop.f32.mrb[47].mxu0  ;;  %2758 = vmatmul.mubr.bf16.gmra.mrb[72].mxu1 %v1480_v55  ;;  %v1465_v1 = vmax.f32 %v1429_v58, 0.0 }
 0x40c   : > { %v1424_v0 = vadd.f32 %v4089_v32, %v1423_v63  ;;  %v1463_v3 = vmax.f32 %v1421_v60, 0.0 }
 0x40d   : > { %v1466_v2 = vmax.f32 %v1432_v62, 0.0 }
 0x40e   : > { %v1464_v4 = vmax.f32 %v1424_v0, 0.0 }
 0x40f   : > { %v1482_v5 = vpack.c.bf16 %v1466_v2, %v1465_v1 }
 0x410   : > { %v1481_v6 = vpack.c.bf16 %v1464_v4, %v1463_v3 }
 0x412   : > { %2761 = vmatprep.mubr.bf16.mxu1 %v1481_v6 }
 0x413   : > { %2762 = vmatmul.mubr.bf16.gmra.mrb[76].mxu1 %v1482_v5 }
 0x4ae   : > { %v2735_v11 = vpop.f32.mrb[48].mxu1 }
 0x4af   : > { %v1597_v12 = vadd.f32 %v2735_v11, %v4123_v10  ;;  %v1588_v13 = vpop.f32.mrb[49].mxu1 }
 0x4b0   : > { %v1589_v14 = vadd.f32 %v4123_v10, %v1588_v13  ;;  %v2736_v32 = vpop.f32.mrb[50].mxu1 }
 0x4b1   : > { %v1600_v15 = vadd.f32 %v2736_v32, %v4123_v10  ;;  %v1591_v16 = vpop.f32.mrb[51].mxu1  ;;  %v1717_v18 = vmax.f32 %v1597_v12, 0.0 }
 0x4b2   : > { %v1592_v17 = vadd.f32 %v4123_v10, %v1591_v16  ;;  %v1715_v19 = vmax.f32 %v1589_v14, 0.0 }
 0x4b3   : > { %v1718_v26 = vmax.f32 %v1600_v15, 0.0 }
 0x4b4   : > { %v1716_v20 = vmax.f32 %v1592_v17, 0.0 }
 0x4b5   : > { %v1748_v21 = vpack.c.bf16 %v1718_v26, %v1717_v18 }
 0x4b6   : > { %v1747_v9 = vpack.c.bf16 %v1716_v20, %v1715_v19  ;;  %v2739_v22 = vpop.f32.mrb[52].mxu1 }
 0x4b7   : > { %v1613_v7 = vadd.f32 %v2739_v22, %v4123_v10  ;;  %v1604_v23 = vpop.f32.mrb[53].mxu1 }
 0x4b8   : > { %v1605_v24 = vadd.f32 %v4123_v10, %v1604_v23  ;;  %v2740_v25 = vpop.f32.mrb[54].mxu1  ;;  %2781 = vmatprep.mubr.bf16.mxu0 %v1747_v9 }
 0x4b9   : > { %v1616_v27 = vadd.f32 %v2740_v25, %v4123_v10  ;;  %v1607_v28 = vpop.f32.mrb[55].mxu1  ;;  %2782 = vmatmul.mubr.bf16.vlgmr.msra.gmra.mrb[48].mxu0 %v1748_v21  ;;  %v1721_v30 = vmax.f32 %v1613_v7, 0.0 }
 0x4ba   : > { %v1608_v29 = vadd.f32 %v4123_v10, %v1607_v28  ;;  %v1719_v33 = vmax.f32 %v1605_v24, 0.0 }
 0x4bb   : > { %v1722_v31 = vmax.f32 %v1616_v27, 0.0 }
 0x4bc   : > { %v1720_v34 = vmax.f32 %v1608_v29, 0.0 }
 0x4bd   : > { %v1750_v35 = vpack.c.bf16 %v1722_v31, %v1721_v30 }
 0x4be   : > { %v1749_v36 = vpack.c.bf16 %v1720_v34, %v1719_v33  ;;  %v2743_v37 = vpop.f32.mrb[56].mxu1 }
 0x4bf   : > { %v1629_v38 = vadd.f32 %v2743_v37, %v4123_v10  ;;  %v1620_v39 = vpop.f32.mrb[57].mxu1 }
 0x4c0   : > { %v1621_v40 = vadd.f32 %v4123_v10, %v1620_v39  ;;  %v2744_v41 = vpop.f32.mrb[58].mxu1  ;;  %2785 = vmatprep.mubr.bf16.mxu0 %v1749_v36 }
 0x4c1   : > { %v1632_v42 = vadd.f32 %v2744_v41, %v4123_v10  ;;  %v1623_v43 = vpop.f32.mrb[59].mxu1  ;;  %2786 = vmatmul.mubr.bf16.gmra.mrb[52].mxu0 %v1750_v35  ;;  %v1725_v45 = vmax.f32 %v1629_v38, 0.0 }
 0x4c2   : > { %v1624_v44 = vadd.f32 %v4123_v10, %v1623_v43  ;;  %v1723_v47 = vmax.f32 %v1621_v40, 0.0 }
 0x4c3   : > { %v1726_v46 = vmax.f32 %v1632_v42, 0.0 }
 0x4c4   : > { %v1724_v48 = vmax.f32 %v1624_v44, 0.0 }
 0x4c5   : > { %v1752_v49 = vpack.c.bf16 %v1726_v46, %v1725_v45 }
 0x4c6   : > { %v1751_v50 = vpack.c.bf16 %v1724_v48, %v1723_v47  ;;  %v2747_v51 = vpop.f32.mrb[60].mxu1 }
 0x4c7   : > { %v1645_v52 = vadd.f32 %v2747_v51, %v4123_v10  ;;  %v1636_v53 = vpop.f32.mrb[61].mxu1 }
 0x4c8   : > { %v1637_v54 = vadd.f32 %v4123_v10, %v1636_v53  ;;  %v2748_v55 = vpop.f32.mrb[62].mxu1  ;;  %2789 = vmatprep.mubr.bf16.mxu0 %v1751_v50 }
 0x4c9   : > { %v1648_v56 = vadd.f32 %v2748_v55, %v4123_v10  ;;  %v1639_v57 = vpop.f32.mrb[63].mxu1  ;;  %2790 = vmatmul.mubr.bf16.gmra.mrb[56].mxu0 %v1752_v49  ;;  %v1729_v59 = vmax.f32 %v1645_v52, 0.0 }
 0x4ca   : > { %v1640_v58 = vadd.f32 %v4123_v10, %v1639_v57  ;;  %v1727_v61 = vmax.f32 %v1637_v54, 0.0 }
 0x4cb   : > { %v1730_v60 = vmax.f32 %v1648_v56, 0.0 }
 0x4cc   : > { %v1728_v62 = vmax.f32 %v1640_v58, 0.0  ;;  %v4157_v58 = vld [vmem:[#allocation19] ss:$0 sm:$0xff] }
 0x4cd   : > { %v1754_v63 = vpack.c.bf16 %v1730_v60, %v1729_v59 }
 0x4ce   : > { %v1753_v0 = vpack.c.bf16 %v1728_v62, %v1727_v61  ;;  %v2751_v1 = vpop.f32.mrb[64].mxu1 }
 0x4cf   : > { %v1661_v2 = vadd.f32 %v2751_v1, %v4123_v10  ;;  %v1652_v3 = vpop.f32.mrb[65].mxu1 }
 0x4d0   : > { %v1653_v4 = vadd.f32 %v4123_v10, %v1652_v3  ;;  %v2752_v5 = vpop.f32.mrb[66].mxu1  ;;  %2793 = vmatprep.mubr.bf16.mxu0 %v1753_v0 }
 0x4d1   : > { %v1664_v6 = vadd.f32 %v2752_v5, %v4123_v10  ;;  %v1655_v8 = vpop.f32.mrb[67].mxu1  ;;  %2794 = vmatmul.mubr.bf16.gmra.mrb[60].mxu0 %v1754_v63  ;;  %v1733_v12 = vmax.f32 %v1661_v2, 0.0 }
 0x4d2   : > { %v1656_v11 = vadd.f32 %v4123_v10, %v1655_v8  ;;  %v1731_v14 = vmax.f32 %v1653_v4, 0.0 }
 0x4d3   : > { %v1734_v13 = vmax.f32 %v1664_v6, 0.0 }
 0x4d4   : > { %v1732_v32 = vmax.f32 %v1656_v11, 0.0 }
 0x4d5   : > { %v1756_v15 = vpack.c.bf16 %v1734_v13, %v1733_v12 }
 0x4d6   : > { %v1755_v16 = vpack.c.bf16 %v1732_v32, %v1731_v14  ;;  %v2755_v17 = vpop.f32.mrb[68].mxu1 }
 0x4d7   : > { %v1677_v18 = vadd.f32 %v2755_v17, %v4123_v10  ;;  %v1668_v26 = vpop.f32.mrb[69].mxu1 }
 0x4d8   : > { %v1669_v19 = vadd.f32 %v4123_v10, %v1668_v26  ;;  %v2756_v20 = vpop.f32.mrb[70].mxu1  ;;  %2797 = vmatprep.mubr.bf16.mxu0 %v1755_v16 }
 0x4d9   : > { %v1680_v21 = vadd.f32 %v2756_v20, %v4123_v10  ;;  %v1671_v9 = vpop.f32.mrb[71].mxu1  ;;  %2798 = vmatmul.mubr.bf16.gmra.mrb[64].mxu0 %v1756_v15  ;;  %v1737_v7 = vmax.f32 %v1677_v18, 0.0 }
 0x4da   : > { %v1672_v22 = vadd.f32 %v4123_v10, %v1671_v9  ;;  %v1735_v24 = vmax.f32 %v1669_v19, 0.0 }
 0x4db   : > { %v1738_v23 = vmax.f32 %v1680_v21, 0.0 }
 0x4dc   : > { %v1736_v25 = vmax.f32 %v1672_v22, 0.0 }
 0x4dd   : > { %v1758_v27 = vpack.c.bf16 %v1738_v23, %v1737_v7 }
 0x4de   : > { %v1757_v28 = vpack.c.bf16 %v1736_v25, %v1735_v24  ;;  %v2759_v29 = vpop.f32.mrb[72].mxu1 }
 0x4df   : > { %v1693_v30 = vadd.f32 %v2759_v29, %v4123_v10  ;;  %v1684_v31 = vpop.f32.mrb[73].mxu1 }
 0x4e0   : > { %v1685_v33 = vadd.f32 %v4123_v10, %v1684_v31  ;;  %v2760_v34 = vpop.f32.mrb[74].mxu1  ;;  %2801 = vmatprep.mubr.bf16.mxu0 %v1757_v28 }
 0x4e1   : > { %v1696_v35 = vadd.f32 %v2760_v34, %v4123_v10  ;;  %v1687_v36 = vpop.f32.mrb[75].mxu1  ;;  %2802 = vmatmul.mubr.bf16.gmra.mrb[68].mxu0 %v1758_v27  ;;  %v1741_v38 = vmax.f32 %v1693_v30, 0.0 }
 0x4e2   : > { %v1688_v37 = vadd.f32 %v4123_v10, %v1687_v36  ;;  %v1739_v40 = vmax.f32 %v1685_v33, 0.0 }
 0x4e3   : > { %v1742_v39 = vmax.f32 %v1696_v35, 0.0 }
 0x4e4   : > { %v1740_v41 = vmax.f32 %v1688_v37, 0.0 }
 0x4e5   : > { %v1760_v42 = vpack.c.bf16 %v1742_v39, %v1741_v38 }
 0x4e6   : > { %v1759_v43 = vpack.c.bf16 %v1740_v41, %v1739_v40  ;;  %v2763_v44 = vpop.f32.mrb[76].mxu1 }
 0x4e7   : > { %v1709_v45 = vadd.f32 %v2763_v44, %v4123_v10  ;;  %v1700_v46 = vpop.f32.mrb[77].mxu1 }
 0x4e8   : > { %v1701_v47 = vadd.f32 %v4123_v10, %v1700_v46  ;;  %v2764_v48 = vpop.f32.mrb[78].mxu1  ;;  %2805 = vmatprep.mubr.bf16.mxu0 %v1759_v43 }
 0x4e9   : > { %v1712_v49 = vadd.f32 %v2764_v48, %v4123_v10  ;;  %v1703_v50 = vpop.f32.mrb[79].mxu1  ;;  %2806 = vmatmul.mubr.bf16.gmra.mrb[72].mxu0 %v1760_v42  ;;  %v1745_v52 = vmax.f32 %v1709_v45, 0.0 }
 0x4ea   : > { %v1704_v51 = vadd.f32 %v4123_v10, %v1703_v50  ;;  %v1743_v54 = vmax.f32 %v1701_v47, 0.0 }
 0x4eb   : > { %v1746_v53 = vmax.f32 %v1712_v49, 0.0 }
 0x4ec   : > { %v1744_v55 = vmax.f32 %v1704_v51, 0.0 }
 0x4ed   : > { %v1762_v56 = vpack.c.bf16 %v1746_v53, %v1745_v52 }
 0x4ee   : > { %v1761_v57 = vpack.c.bf16 %v1744_v55, %v1743_v54 }
 0x4f0   : > { %2809 = vmatprep.mubr.bf16.mxu0 %v1761_v57 }
 0x4f1   : > { %2810 = vmatmul.mubr.bf16.gmra.mrb[76].mxu0 %v1762_v56 }
 0x58c   : > { %v2783_v59 = vpop.f32.mrb[48].mxu0 }
 0x58d   : > { %v1877_v60 = vadd.f32 %v2783_v59, %v4157_v58  ;;  %v1868_v61 = vpop.f32.mrb[49].mxu0 }
 0x58e   : > { %v1869_v62 = vadd.f32 %v4157_v58, %v1868_v61  ;;  %v2784_v63 = vpop.f32.mrb[50].mxu0 }
 0x58f   : > { %v1997_v0 = vsub.f32 0.0, %v1877_v60  ;;  %v1880_v10 = vadd.f32 %v2784_v63, %v4157_v58  ;;  %v1871_v1 = vpop.f32.mrb[51].mxu0 }
 0x590   : > { %v1995_v2 = vsub.f32 0.0, %v1869_v62  ;;  %v1872_v3 = vadd.f32 %v4157_v58, %v1871_v1 }
 0x591   : > { %v2031_v4 = vmul.f32 1.442695, %v1997_v0  ;;  %v1998_v5 = vsub.f32 0.0, %v1880_v10 }
 0x592   : > { %v2027_v6 = vmul.f32 1.442695, %v1995_v2  ;;  %v1996_v8 = vsub.f32 0.0, %v1872_v3 }
 0x593   : > { %3016 = vpow2.f32 %v2031_v4  ;;  %v2033_v11 = vmul.f32 1.442695, %v1998_v5 }
 0x594   : > { %3018 = vpow2.f32 %v2027_v6  ;;  %v2029_v12 = vmul.f32 1.442695, %v1996_v8  ;;  %v2787_v13 = vpop.f32.mrb[52].mxu0 }
 0x595   : > { %3020 = vpow2.f32 %v2033_v11  ;;  %v1893_v14 = vadd.f32 %v2787_v13, %v4157_v58  ;;  %v1884_v32 = vpop.f32.mrb[53].mxu0 }
 0x596   : > { %3022 = vpow2.f32 %v2029_v12  ;;  %v1885_v15 = vadd.f32 %v4157_v58, %v1884_v32  ;;  %v2788_v16 = vpop.f32.mrb[54].mxu0 }
 0x597   : > { %v2001_v17 = vsub.f32 0.0, %v1893_v14  ;;  %v1896_v18 = vadd.f32 %v2788_v16, %v4157_v58  ;;  %v1887_v26 = vpop.f32.mrb[55].mxu0 }
 0x598   : > { %v1999_v19 = vsub.f32 0.0, %v1885_v15  ;;  %v1888_v20 = vadd.f32 %v4157_v58, %v1887_v26 }
 0x599   : > { %v2039_v21 = vmul.f32 1.442695, %v2001_v17  ;;  %v2002_v9 = vsub.f32 0.0, %v1896_v18 }
 0x59a   : > { %v2035_v22 = vmul.f32 1.442695, %v1999_v19  ;;  %v2000_v7 = vsub.f32 0.0, %v1888_v20 }
 0x59b   : > { %3024 = vpow2.f32 %v2039_v21  ;;  %v2041_v23 = vmul.f32 1.442695, %v2002_v9 }
 0x59c   : > { %3026 = vpow2.f32 %v2035_v22  ;;  %v2037_v24 = vmul.f32 1.442695, %v2000_v7  ;;  %v2791_v25 = vpop.f32.mrb[56].mxu0 }
 0x59d   : > { %v3017_v27 = vpop.eup %3016  ;;  %3028 = vpow2.f32 %v2041_v23  ;;  %v1909_v28 = vadd.f32 %v2791_v25, %v4157_v58  ;;  %v1900_v29 = vpop.f32.mrb[57].mxu0 }
 0x59e   : > { %v3019_v30 = vpop.eup %3018  ;;  %v2093_v31 = vadd.f32 1.0, %v3017_v27  ;;  %3030 = vpow2.f32 %v2037_v24  ;;  %v1901_v33 = vadd.f32 %v4157_v58, %v1900_v29  ;;  %v2792_v34 = vpop.f32.mrb[58].mxu0 }
 0x59f   : > { %v3021_v35 = vpop.eup %3020  ;;  %v2091_v36 = vadd.f32 1.0, %v3019_v30  ;;  %v2005_v37 = vsub.f32 0.0, %v1909_v28  ;;  %v1912_v38 = vadd.f32 %v2792_v34, %v4157_v58  ;;  %v1903_v39 = vpop.f32.mrb[59].mxu0 }
 0x5a0   : > { %v3023_v40 = vpop.eup %3022  ;;  %3032 = vrcp.f32 %v2093_v31  ;;  %v2094_v41 = vadd.f32 1.0, %v3021_v35  ;;  %v2003_v42 = vsub.f32 0.0, %v1901_v33  ;;  %v1904_v43 = vadd.f32 %v4157_v58, %v1903_v39 }
 0x5a1   : > { %3034 = vrcp.f32 %v2091_v36  ;;  %v2092_v44 = vadd.f32 1.0, %v3023_v40  ;;  %v2047_v45 = vmul.f32 1.442695, %v2005_v37  ;;  %v2006_v46 = vsub.f32 0.0, %v1912_v38 }
 0x5a2   : > { %3036 = vrcp.f32 %v2094_v41  ;;  %v2043_v47 = vmul.f32 1.442695, %v2003_v42  ;;  %v2004_v48 = vsub.f32 0.0, %v1904_v43 }
 0x5a3   : > { %3038 = vrcp.f32 %v2092_v44  ;;  %v2049_v49 = vmul.f32 1.442695, %v2006_v46 }
 0x5a4   : > { %3040 = vpow2.f32 %v2047_v45  ;;  %v2045_v50 = vmul.f32 1.442695, %v2004_v48  ;;  %v2795_v51 = vpop.f32.mrb[60].mxu0 }
 0x5a5   : > { %v3025_v52 = vpop.eup %3024  ;;  %3042 = vpow2.f32 %v2043_v47  ;;  %v1925_v53 = vadd.f32 %v2795_v51, %v4157_v58  ;;  %v1916_v54 = vpop.f32.mrb[61].mxu0 }
 0x5a6   : > { %v3027_v55 = vpop.eup %3026  ;;  %v2097_v56 = vadd.f32 1.0, %v3025_v52  ;;  %3044 = vpow2.f32 %v2049_v49  ;;  %v1917_v57 = vadd.f32 %v4157_v58, %v1916_v54  ;;  %v2796_v59 = vpop.f32.mrb[62].mxu0 }
 0x5a7   : > { %v3029_v60 = vpop.eup %3028  ;;  %v2095_v61 = vadd.f32 1.0, %v3027_v55  ;;  %3046 = vpow2.f32 %v2045_v50  ;;  %v2009_v62 = vsub.f32 0.0, %v1925_v53  ;;  %v1928_v63 = vadd.f32 %v2796_v59, %v4157_v58  ;;  %v1919_v0 = vpop.f32.mrb[63].mxu0 }
 0x5a8   : > { %v3031_v10 = vpop.eup %3030  ;;  %3048 = vrcp.f32 %v2097_v56  ;;  %v2098_v1 = vadd.f32 1.0, %v3029_v60  ;;  %v2007_v2 = vsub.f32 0.0, %v1917_v57  ;;  %v1920_v3 = vadd.f32 %v4157_v58, %v1919_v0 }
 0x5a9   : > { %3050 = vrcp.f32 %v2095_v61  ;;  %v2096_v4 = vadd.f32 1.0, %v3031_v10  ;;  %v2055_v5 = vmul.f32 1.442695, %v2009_v62  ;;  %v2010_v6 = vsub.f32 0.0, %v1928_v63 }
 0x5aa   : > { %v3033_v8 = vpop.eup %3032  ;;  %3052 = vrcp.f32 %v2098_v1  ;;  %v2051_v11 = vmul.f32 1.442695, %v2007_v2  ;;  %v2008_v12 = vsub.f32 0.0, %v1920_v3 }
 0x5ab   : > { %v3035_v13 = vpop.eup %3034  ;;  %2157 = vst [vmem:[%s4176_s11 + $0x10] sm:$0xff] %v3033_v8  ;;  %3054 = vrcp.f32 %v2096_v4  ;;  %v2057_v14 = vmul.f32 1.442695, %v2010_v6 }
 0x5ac   : > { %v3037_v32 = vpop.eup %3036  ;;  %2155 = vst [vmem:[%s4176_s11] sm:$0xff] %v3035_v13  ;;  %3056 = vpow2.f32 %v2055_v5  ;;  %v2053_v15 = vmul.f32 1.442695, %v2008_v12  ;;  %v2799_v16 = vpop.f32.mrb[64].mxu0 }
 0x5ad   : > { %v3039_v17 = vpop.eup %3038  ;;  %2158 = vst [vmem:[%s4176_s11 + $0x18] sm:$0xff] %v3037_v32  ;;  %3058 = vpow2.f32 %v2051_v11  ;;  %v1941_v18 = vadd.f32 %v2799_v16, %v4157_v58  ;;  %v1932_v26 = vpop.f32.mrb[65].mxu0 }
 0x5ae   : > { %v3041_v19 = vpop.eup %3040  ;;  %2156 = vst [vmem:[%s4176_s11 + $0x8] sm:$0xff] %v3039_v17  ;;  %3060 = vpow2.f32 %v2057_v14  ;;  %v1933_v20 = vadd.f32 %v4157_v58, %v1932_v26  ;;  %v2800_v21 = vpop.f32.mrb[66].mxu0 }
 0x5af   : > { %v3043_v9 = vpop.eup %3042  ;;  %v2101_v22 = vadd.f32 1.0, %v3041_v19  ;;  %3062 = vpow2.f32 %v2053_v15  ;;  %v2013_v7 = vsub.f32 0.0, %v1941_v18  ;;  %v1944_v23 = vadd.f32 %v2800_v21, %v4157_v58  ;;  %v1935_v24 = vpop.f32.mrb[67].mxu0 }
 0x5b0   : > { %v3045_v25 = vpop.eup %3044  ;;  %v2099_v27 = vadd.f32 1.0, %v3043_v9  ;;  %v2011_v28 = vsub.f32 0.0, %v1933_v20  ;;  %v1936_v29 = vadd.f32 %v4157_v58, %v1935_v24 }
 0x5b1   : > { %v3047_v30 = vpop.eup %3046  ;;  %3064 = vrcp.f32 %v2101_v22  ;;  %v2102_v31 = vadd.f32 1.0, %v3045_v25  ;;  %v2063_v33 = vmul.f32 1.442695, %v2013_v7  ;;  %v2014_v34 = vsub.f32 0.0, %v1944_v23 }
 0x5b2   : > { %v3049_v35 = vpop.eup %3048  ;;  %3066 = vrcp.f32 %v2099_v27  ;;  %v2100_v36 = vadd.f32 1.0, %v3047_v30  ;;  %v2059_v37 = vmul.f32 1.442695, %v2011_v28  ;;  %v2012_v38 = vsub.f32 0.0, %v1936_v29 }
 0x5b3   : > { %v3051_v39 = vpop.eup %3050  ;;  %2161 = vst [vmem:[%s4176_s11 + $0x30] sm:$0xff] %v3049_v35  ;;  %3068 = vrcp.f32 %v2102_v31  ;;  %v2065_v40 = vmul.f32 1.442695, %v2014_v34 }
 0x5b4   : > { %v3053_v41 = vpop.eup %3052  ;;  %2159 = vst [vmem:[%s4176_s11 + $0x20] sm:$0xff] %v3051_v39  ;;  %3070 = vrcp.f32 %v2100_v36  ;;  %v2061_v42 = vmul.f32 1.442695, %v2012_v38  ;;  %v2803_v43 = vpop.f32.mrb[68].mxu0 }
 0x5b5   : > { %v3055_v44 = vpop.eup %3054  ;;  %2162 = vst [vmem:[%s4176_s11 + $0x38] sm:$0xff] %v3053_v41  ;;  %3072 = vpow2.f32 %v2063_v33  ;;  %v1957_v45 = vadd.f32 %v2803_v43, %v4157_v58  ;;  %v1948_v46 = vpop.f32.mrb[69].mxu0 }
 0x5b6   : > { %v3057_v47 = vpop.eup %3056  ;;  %2160 = vst [vmem:[%s4176_s11 + $0x28] sm:$0xff] %v3055_v44  ;;  %3074 = vpow2.f32 %v2059_v37  ;;  %v1949_v48 = vadd.f32 %v4157_v58, %v1948_v46  ;;  %v2804_v49 = vpop.f32.mrb[70].mxu0 }
 0x5b7   : > { %v3059_v50 = vpop.eup %3058  ;;  %v2105_v51 = vadd.f32 1.0, %v3057_v47  ;;  %3076 = vpow2.f32 %v2065_v40  ;;  %v2017_v52 = vsub.f32 0.0, %v1957_v45  ;;  %v1960_v53 = vadd.f32 %v2804_v49, %v4157_v58  ;;  %v1951_v54 = vpop.f32.mrb[71].mxu0 }
 0x5b8   : > { %v3061_v55 = vpop.eup %3060  ;;  %v2103_v56 = vadd.f32 1.0, %v3059_v50  ;;  %3078 = vpow2.f32 %v2061_v42  ;;  %v2015_v57 = vsub.f32 0.0, %v1949_v48  ;;  %v1952_v59 = vadd.f32 %v4157_v58, %v1951_v54 }
 0x5b9   : > { %v3063_v60 = vpop.eup %3062  ;;  %3080 = vrcp.f32 %v2105_v51  ;;  %v2106_v61 = vadd.f32 1.0, %v3061_v55  ;;  %v2071_v62 = vmul.f32 1.442695, %v2017_v52  ;;  %v2018_v63 = vsub.f32 0.0, %v1960_v53 }
 0x5ba   : > { %3082 = vrcp.f32 %v2103_v56  ;;  %v2104_v0 = vadd.f32 1.0, %v3063_v60  ;;  %v2067_v10 = vmul.f32 1.442695, %v2015_v57  ;;  %v2016_v1 = vsub.f32 0.0, %v1952_v59 }
 0x5bb   : > { %v3065_v2 = vpop.eup %3064  ;;  %3084 = vrcp.f32 %v2106_v61  ;;  %v2073_v3 = vmul.f32 1.442695, %v2018_v63 }
 0x5bc   : > { %v3067_v4 = vpop.eup %3066  ;;  %2165 = vst [vmem:[%s4176_s11 + $0x50] sm:$0xff] %v3065_v2  ;;  %3086 = vrcp.f32 %v2104_v0  ;;  %v2069_v5 = vmul.f32 1.442695, %v2016_v1  ;;  %v2807_v6 = vpop.f32.mrb[72].mxu0 }
 0x5bd   : > { %v3069_v8 = vpop.eup %3068  ;;  %2163 = vst [vmem:[%s4176_s11 + $0x40] sm:$0xff] %v3067_v4  ;;  %3088 = vpow2.f32 %v2071_v62  ;;  %v1973_v11 = vadd.f32 %v2807_v6, %v4157_v58  ;;  %v1964_v12 = vpop.f32.mrb[73].mxu0 }
 0x5be   : > { %v3071_v13 = vpop.eup %3070  ;;  %2166 = vst [vmem:[%s4176_s11 + $0x58] sm:$0xff] %v3069_v8  ;;  %3090 = vpow2.f32 %v2067_v10  ;;  %v1965_v14 = vadd.f32 %v4157_v58, %v1964_v12  ;;  %v2808_v32 = vpop.f32.mrb[74].mxu0 }
 0x5bf   : > { %v3073_v15 = vpop.eup %3072  ;;  %2164 = vst [vmem:[%s4176_s11 + $0x48] sm:$0xff] %v3071_v13  ;;  %3092 = vpow2.f32 %v2073_v3  ;;  %v2021_v16 = vsub.f32 0.0, %v1973_v11  ;;  %v1976_v17 = vadd.f32 %v2808_v32, %v4157_v58  ;;  %v1967_v18 = vpop.f32.mrb[75].mxu0 }
 0x5c0   : > { %v3075_v26 = vpop.eup %3074  ;;  %v2109_v19 = vadd.f32 1.0, %v3073_v15  ;;  %3094 = vpow2.f32 %v2069_v5  ;;  %v2019_v20 = vsub.f32 0.0, %v1965_v14  ;;  %v1968_v21 = vadd.f32 %v4157_v58, %v1967_v18 }
 0x5c1   : > { %v3077_v9 = vpop.eup %3076  ;;  %v2107_v22 = vadd.f32 1.0, %v3075_v26  ;;  %v2022_v7 = vsub.f32 0.0, %v1976_v17  ;;  %v2079_v25 = vmul.f32 1.442695, %v2021_v16 }
 0x5c2   : > { %v3079_v23 = vpop.eup %3078  ;;  %3096 = vrcp.f32 %v2109_v19  ;;  %v2110_v24 = vadd.f32 1.0, %v3077_v9  ;;  %v2020_v27 = vsub.f32 0.0, %v1968_v21  ;;  %v2075_v30 = vmul.f32 1.442695, %v2019_v20 }
 0x5c3   : > { %v3081_v28 = vpop.eup %3080  ;;  %3098 = vrcp.f32 %v2107_v22  ;;  %v2108_v29 = vadd.f32 1.0, %v3079_v23  ;;  %v2081_v33 = vmul.f32 1.442695, %v2022_v7 }
 0x5c4   : > { %v3083_v31 = vpop.eup %3082  ;;  %2169 = vst [vmem:[%s4176_s11 + $0x70] sm:$0xff] %v3081_v28  ;;  %3100 = vrcp.f32 %v2110_v24  ;;  %v2811_v34 = vpop.f32.mrb[76].mxu0  ;;  %v2077_v36 = vmul.f32 1.442695, %v2020_v27 }
 0x5c5   : > { %v3085_v35 = vpop.eup %3084  ;;  %2167 = vst [vmem:[%s4176_s11 + $0x60] sm:$0xff] %v3083_v31  ;;  %3102 = vrcp.f32 %v2108_v29  ;;  %v1989_v37 = vadd.f32 %v2811_v34, %v4157_v58  ;;  %v1980_v38 = vpop.f32.mrb[77].mxu0 }
 0x5c6   : > { %v3087_v39 = vpop.eup %3086  ;;  %2170 = vst [vmem:[%s4176_s11 + $0x78] sm:$0xff] %v3085_v35  ;;  %3104 = vpow2.f32 %v2079_v25  ;;  %v1981_v40 = vadd.f32 %v4157_v58, %v1980_v38  ;;  %v2812_v41 = vpop.f32.mrb[78].mxu0 }
 0x5c7   : > { %v3089_v42 = vpop.eup %3088  ;;  %2168 = vst [vmem:[%s4176_s11 + $0x68] sm:$0xff] %v3087_v39  ;;  %3106 = vpow2.f32 %v2075_v30  ;;  %v2025_v43 = vsub.f32 0.0, %v1989_v37  ;;  %v1992_v44 = vadd.f32 %v2812_v41, %v4157_v58  ;;  %v1983_v45 = vpop.f32.mrb[79].mxu0 }
 0x5c8   : > { %v3091_v46 = vpop.eup %3090  ;;  %v2113_v47 = vadd.f32 1.0, %v3089_v42  ;;  %3108 = vpow2.f32 %v2081_v33  ;;  %v2023_v48 = vsub.f32 0.0, %v1981_v40  ;;  %v1984_v49 = vadd.f32 %v4157_v58, %v1983_v45 }
 0x5c9   : > { %v3093_v50 = vpop.eup %3092  ;;  %v2111_v51 = vadd.f32 1.0, %v3091_v46  ;;  %3110 = vpow2.f32 %v2077_v36  ;;  %v2026_v52 = vsub.f32 0.0, %v1992_v44  ;;  %v2087_v55 = vmul.f32 1.442695, %v2025_v43 }
 0x5ca   : > { %v3095_v53 = vpop.eup %3094  ;;  %3112 = vrcp.f32 %v2113_v47  ;;  %v2114_v54 = vadd.f32 1.0, %v3093_v50  ;;  %v2024_v56 = vsub.f32 0.0, %v1984_v49  ;;  %v2083_v59 = vmul.f32 1.442695, %v2023_v48 }
 0x5cb   : > { %3114 = vrcp.f32 %v2111_v51  ;;  %v2112_v57 = vadd.f32 1.0, %v3095_v53  ;;  %v2089_v61 = vmul.f32 1.442695, %v2026_v52 }
 0x5cc   : > { %v3097_v60 = vpop.eup %3096  ;;  %3116 = vrcp.f32 %v2114_v54  ;;  %v2085_v62 = vmul.f32 1.442695, %v2024_v56 }
 0x5cd   : > { %v3099_v58 = vpop.eup %3098  ;;  %2173 = vst [vmem:[%s4176_s11 + $0x90] sm:$0xff] %v3097_v60  ;;  %3118 = vrcp.f32 %v2112_v57 }
 0x5ce   : > { %v3101_v63 = vpop.eup %3100  ;;  %2171 = vst [vmem:[%s4176_s11 + $0x80] sm:$0xff] %v3099_v58  ;;  %3120 = vpow2.f32 %v2087_v55 }
 0x5cf   : > { %v3103_v0 = vpop.eup %3102  ;;  %2174 = vst [vmem:[%s4176_s11 + $0x98] sm:$0xff] %v3101_v63  ;;  %3122 = vpow2.f32 %v2083_v59 }
 0x5d0   : > { %v3105_v10 = vpop.eup %3104  ;;  %2172 = vst [vmem:[%s4176_s11 + $0x88] sm:$0xff] %v3103_v0  ;;  %3124 = vpow2.f32 %v2089_v61 }
 0x5d1   : > { %v3107_v1 = vpop.eup %3106  ;;  %v2117_v2 = vadd.f32 1.0, %v3105_v10  ;;  %3126 = vpow2.f32 %v2085_v62 }
 0x5d2   : > { %v3109_v3 = vpop.eup %3108  ;;  %v2115_v4 = vadd.f32 1.0, %v3107_v1 }
 0x5d3   : > { %v3111_v5 = vpop.eup %3110  ;;  %3128 = vrcp.f32 %v2117_v2  ;;  %v2118_v6 = vadd.f32 1.0, %v3109_v3 }
 0x5d4   : > { %v3113_v8 = vpop.eup %3112  ;;  %3130 = vrcp.f32 %v2115_v4  ;;  %v2116_v11 = vadd.f32 1.0, %v3111_v5 }
 0x5d5   : > { %v3115_v12 = vpop.eup %3114  ;;  %2177 = vst [vmem:[%s4176_s11 + $0xb0] sm:$0xff] %v3113_v8  ;;  %3132 = vrcp.f32 %v2118_v6 }
 0x5d6   : > { %v3117_v13 = vpop.eup %3116  ;;  %2175 = vst [vmem:[%s4176_s11 + $0xa0] sm:$0xff] %v3115_v12  ;;  %3134 = vrcp.f32 %v2116_v11 }
 0x5d7   : > { %v3119_v14 = vpop.eup %3118  ;;  %2178 = vst [vmem:[%s4176_s11 + $0xb8] sm:$0xff] %v3117_v13 }
 0x5d8   : > { %v3121_v32 = vpop.eup %3120  ;;  %2176 = vst [vmem:[%s4176_s11 + $0xa8] sm:$0xff] %v3119_v14 }
 0x5d9   : > { %v3123_v15 = vpop.eup %3122  ;;  %v2121_v16 = vadd.f32 1.0, %v3121_v32 }
 0x5da   : > { %v3125_v17 = vpop.eup %3124  ;;  %v2119_v18 = vadd.f32 1.0, %v3123_v15 }
 0x5db   : > { %v3127_v26 = vpop.eup %3126  ;;  %3136 = vrcp.f32 %v2121_v16  ;;  %v2122_v19 = vadd.f32 1.0, %v3125_v17 }
 0x5dc   : > { %3138 = vrcp.f32 %v2119_v18  ;;  %v2120_v20 = vadd.f32 1.0, %v3127_v26 }
 0x5dd   : > { %v3129_v21 = vpop.eup %3128  ;;  %3140 = vrcp.f32 %v2122_v19 }
 0x5de   : > { %v3131_v9 = vpop.eup %3130  ;;  %2181 = vst [vmem:[%s4176_s11 + $0xd0] sm:$0xff] %v3129_v21  ;;  %3142 = vrcp.f32 %v2120_v20 }
 0x5df   : > { %v3133_v22 = vpop.eup %3132  ;;  %2179 = vst [vmem:[%s4176_s11 + $0xc0] sm:$0xff] %v3131_v9 }
 0x5e0   : > { %v3135_v7 = vpop.eup %3134  ;;  %2182 = vst [vmem:[%s4176_s11 + $0xd8] sm:$0xff] %v3133_v22 }
 0x5e1   : > { %2180 = vst [vmem:[%s4176_s11 + $0xc8] sm:$0xff] %v3135_v7 }
 0x5e5   : > { %v3137_v23 = vpop.eup %3136 }
 0x5e6   : > { %v3139_v24 = vpop.eup %3138  ;;  %2185 = vst [vmem:[%s4176_s11 + $0xf0] sm:$0xff] %v3137_v23 }
 0x5e7   : > { %v3141_v25 = vpop.eup %3140  ;;  %2183 = vst [vmem:[%s4176_s11 + $0xe0] sm:$0xff] %v3139_v24 }
 0x5e8   : > { %v3143_v27 = vpop.eup %3142  ;;  %2186 = vst [vmem:[%s4176_s11 + $0xf8] sm:$0xff] %v3141_v25 }
 0x5e9   : > { %2184 = vst [vmem:[%s4176_s11 + $0xe8] sm:$0xff] %v3143_v27 }
 0x5ea   : > { %3467 = shalt.err (!%p3464_p9)
}
 0x5eb   : > { %s3468_s30 = scalar_lea.hbm %s4228_s15, 4096  ;;  %s3472_s25 = scalar_lea.hbm %s4323_s3, 8192 }
 0x5ec   : > { %p3469_p10 = scmp.ne.s32.totalorder %s4228_s15, %s3468_s30  ;;  %p3473_p12 = scmp.lt.u32.totalorder %s4228_s15, %s4323_s3 }
 0x5ed   : > { %p3474_p5 = scmp.lt.u32.totalorder %s3472_s25, %s3468_s30  ;;  %p3476_p4 = scmp.lt.u32.totalorder %s3468_s30, %s4228_s15 }
 0x5ee   : > { %p3470_p11 = pnand %p3469_p10, %p4324_p1 }
 0x5ef   : > { %p3475_p7 = por %p3474_p5, %p3473_p12 }
 0x5f0   : > { %p3471_p6 = pneg %p3470_p11 }
 0x5f1   : > { %p3477_p3 = por %p3476_p4, %p3475_p7 }
 0x5f3   : > { %p3478_p8 = pnand %p3477_p3, %p3471_p6 }
 0x5f5   : > { %3481 = shalt.err (!%p3478_p8)
}
 0x5f6   : > { %s3556_s14 = smov 128   ;;  %s3557_s13 = smov 8  }
 0x5f7   : > { %2859 = dma.vmem_to_hbm [thread:$0]  (%p4324_p1), %s4230_s12, 4096, %s4228_s15, %s2188_s23, %s3556_s14, %s3556_s14, %s3557_s13  }
 0x5f8 PF: > { %s2216_s28 = sand.u32 1, %s3528_s17   ;;  %p4325_p13 = scmp.ne.s32.totalorder %s4308_s29, 0 }
 0x5f9   : > { %p4326_p0 = scmp.ge.s32.totalorder %s3540_s20, 2  ;;  %s2217_s30 = scalar_lea.sflag [#allocation4], %s2216_s28 }
 0x5fb   : > { %p2897_p2 = pnand %p4326_p0, %p4325_p13 }
 0x5fd   : > { %3523 = dma.done.wait (!%p2897_p2), %s2217_s30, 4096  }
 0x5fe   : > { %3525 = vsyncadd (!%p2897_p2), %s2217_s30, 4294963200  ;;  %p29_p9 = scmp.ge.s32.totalorder %s3871_s27, 4   ;;  %s4327_s17 = smov %s3532_s18 }
 0x5ff   : > { %s4328_s18 = smov %s3536_s19  ;;  %s4329_s19 = smov %s3882_s1 }
 0x600   : > { %s4330_s20 = smov %s3871_s27  ;;  %31 = sbr.rel (!%p29_p9) target bundleno = 14 (0xe), region = 149 }
 0x607   :  { %2222 = vsyncpa [#allocation3], 1 }
 0x608   :  { %2224 = vsyncpa [#allocation3 + $0x1], 1 }
 0x609   :  { %2225 = vsyncpa [#allocation6], 1 }
 0x60a   :  { %2226 = vsyncpa [#allocation9], 1 }
 0x60b   :  { %2227 = vsyncpa [#allocation12], 1 }
 0x60c   :  { %2228 = vsyncpa [#allocation15], 1 }
 0x60d   :  { %2229 = vsyncpa [#allocation18], 1 }
 0x60e   :  { %2230 = vsyncpa [#allocation4], 1 }
 0x60f   :  { %2232 = vsyncpa [#allocation4 + $0x1], 1 }

</bundles_post_ra>
